<compile_context>
chip_gen: v6e
topology: v6e:2x2x1
jax: 0.10.0
libtpu: 0.0.40
codegen_flags: <defaults>
</compile_context>

<pallas_src>
from functools import partial

import jax
import jax.numpy as jnp
from jax import lax
from jax.experimental import pallas as pl
from jax.experimental.pallas import tpu as pltpu


def tgat_cell_kernel(adj_ref, x_ref, h_ref,
                     wlr_ref, blr_ref, att_ref, bconv_ref,
                     w1_ref, b1_ref, w2_ref, b2_ref,
                     o_ref, conv_ref, *, heads, hid):
    hc = heads * hid
    adj = adj_ref[...]                 # [tm, Np]     bf16 mask (self-loops incl.)
    h = h_ref[...]                     # [tm, out_ch] f32
    tm, npad = adj.shape

    # --- GATv2: fused source/target linear transform (bf16 MXU, f32 acc) ----
    x = x_ref[...]                     # [Np, Fin] bf16
    xlr = jnp.dot(x, wlr_ref[...], preferred_element_type=jnp.float32) + blr_ref[...]
    xl = xlr[:, :hc]                   # [Np, H*C]  source side (all nodes)
    xr_full = xlr[:, hc:]              # [Np, H*C]  target side
    if npad == tm:                     # single row tile: whole thing is ours
        xr = xr_full
    else:
        start = pl.multiple_of(pl.program_id(0) * tm, tm)
        xr = lax.dynamic_slice_in_dim(xr_full, start, tm, axis=0)   # [tm, H*C]

    xl_t = jnp.transpose(xl)           # [H*C, Np]  lane-dense per-channel rows
    xl_bf = xl.astype(jnp.bfloat16)    # aggregation matmul operand

    mask = adj > 0
    neg_inf = jnp.float32(-1e30)

    for hd in range(heads):            # static unrolled head loop
        # e[i, j] = att_h . LeakyReLU(xr[i] + xl[j]) accumulated channel-wise
        # as lane-dense [tm, Np] tiles (no [N, N, C] intermediate).
        e = jnp.zeros((tm, npad), jnp.float32)
        for c in range(hid):
            cg = hd * hid + c
            z = xr[:, cg:cg + 1] + xl_t[cg:cg + 1, :]        # [tm, Np]
            z = jnp.where(z > 0, z, 0.2 * z)                 # LeakyReLU(0.2)
            e = e + att_ref[hd, c] * z                       # scalar read (SMEM)

        # masked softmax over sources j (self-loops guarantee >=1 valid entry;
        # masked logits are -1e30, so exp underflows to exactly 0 -> no `*adj`)
        e = jnp.where(mask, e, neg_inf)
        m = jnp.max(e, axis=1, keepdims=True)
        p = jnp.exp(e - m)
        alpha = p / jnp.sum(p, axis=1, keepdims=True)

        # out_i = sum_j alpha_ij * xl[j]; write the head slab directly at its
        # lane offset in the VMEM scratch (no concat of 8-lane fragments).
        sl = xl_bf[:, hd * hid:(hd + 1) * hid]               # [Np, C]
        conv_ref[:, hd * hid:(hd + 1) * hid] = jnp.dot(
            alpha.astype(jnp.bfloat16), sl, preferred_element_type=jnp.float32)

    f = jax.nn.sigmoid(conv_ref[...] + bconv_ref[...])        # [tm, out_ch]

    # --- GRU-style update: fused K = 2*out_ch matmuls (module's full linears)
    out_ch = h.shape[1]
    fh = jnp.concatenate([f, h], axis=1).astype(jnp.bfloat16)
    ru = jax.nn.sigmoid(
        jnp.dot(fh, w1_ref[...], preferred_element_type=jnp.float32) + b1_ref[...])
    r = ru[:, :out_ch]
    u = ru[:, out_ch:]
    frh = jnp.concatenate([f, r * h], axis=1).astype(jnp.bfloat16)
    c = jnp.tanh(
        jnp.dot(frh, w2_ref[...], preferred_element_type=jnp.float32) + b2_ref[...])
    o_ref[...] = u * h + (1.0 - u) * c


def tgat_cell(x, edge_index, edge_weight, h, params, *, heads, hid, row_tile=256):
    # edge_weight matches the torch forward signature but is unused there
    # (GATv2Conv is called with (x, edge_index) only).
    del edge_weight
    n, fin = x.shape
    out_ch = h.shape[1]
    hc = heads * hid            # == out_ch for concat=True

    # Target-row tile: multiple of 8 sublanes; whole graph if it fits one tile.
    # Pick row_tile per generation (512-1024 v6e/v5e, 256 for v7x 64 MiB VMEM).
    tm = min(row_tile, ((n + 7) // 8) * 8)
    npad = ((n + tm - 1) // tm) * tm
    ntiles = npad // tm

    # Dense adjacency adj[target, source] (+ self-loops, also on padded rows so
    # no softmax row is empty), stored bf16 to halve the O(N^2) footprint.
    # NOTE: duplicate edges in edge_index collapse to a single entry.
    src, tgt = edge_index[0], edge_index[1]
    adj = jnp.zeros((npad, npad), jnp.float32).at[tgt, src].set(1.0)
    adj = jnp.maximum(adj, jnp.eye(npad, dtype=jnp.float32)).astype(jnp.bfloat16)

    xp = jnp.zeros((npad, fin), jnp.float32).at[:n].set(x).astype(jnp.bfloat16)
    hp = jnp.zeros((npad, out_ch), jnp.float32).at[:n].set(h)

    # Fused GATv2 source/target weights; bf16 MXU operands, f32 biases.
    wlr = jnp.concatenate([params["wl"], params["wr"]], axis=1).astype(jnp.bfloat16)
    blr = jnp.concatenate([params["bl"], params["br"]], axis=1)
    w1 = params["w1"].astype(jnp.bfloat16)
    w2 = params["w2"].astype(jnp.bfloat16)

    kernel = partial(tgat_cell_kernel, heads=heads, hid=hid)
    rep = lambda shape: pl.BlockSpec(shape, lambda i, _s=shape: (0,) * len(_s))

    out = pl.pallas_call(
        kernel,
        out_shape=jax.ShapeDtypeStruct((npad, out_ch), jnp.float32),
        grid=(ntiles,),
        in_specs=[
            pl.BlockSpec((tm, npad), lambda i: (i, 0)),        # adj row tile
            rep((npad, fin)),                                   # x (all sources)
            pl.BlockSpec((tm, out_ch), lambda i: (i, 0)),       # h row tile
            rep((fin, 2 * hc)),                                 # [Wl | Wr]
            rep((1, 2 * hc)),                                   # [bl | br]
            pl.BlockSpec(memory_space=pltpu.MemorySpace.SMEM),  # att (scalar reads)
            rep((1, hc)),                                       # conv bias
            rep((2 * out_ch, 2 * out_ch)),                      # linear1 weight
            rep((1, 2 * out_ch)),                               # linear1 bias
            rep((2 * out_ch, out_ch)),                          # linear2 weight
            rep((1, out_ch)),                                   # linear2 bias
        ],
        out_specs=pl.BlockSpec((tm, out_ch), lambda i: (i, 0)),
        scratch_shapes=[pltpu.VMEM((tm, hc), jnp.float32)],     # conv output slab
        compiler_params=pltpu.CompilerParams(
            dimension_semantics=("parallel",)),                 # 2x on v7x dual-TC
    )(adj, xp, hp, wlr, blr, params["att"], params["bconv"],
      w1, params["b1"], w2, params["b2"])
    return out[:n]


if __name__ == "__main__":
    key = jax.random.PRNGKey(0)
    N, Fin, out_ch, heads = 8, 8, 32, 4        # concat=True -> hid = out_ch // heads
    hid = out_ch // heads

    keys = jax.random.split(key, 16)

    def init(k, shape, scale=0.1):
        return scale * jax.random.normal(k, shape, jnp.float32)

    # Synthetic parameters; PyTorch Linear (y = x W^T + b) is represented as
    # [in, out] matrices.  linear1/linear2 kept as their full matrices so the
    # concat([f, h]) / concat([f, r*h]) matmuls stay fused on the MXU.
    params = {
        "wl":    init(keys[0],  (Fin, heads * hid)),        # GATv2 lin_l
        "bl":    init(keys[1],  (1, heads * hid)),
        "wr":    init(keys[2],  (Fin, heads * hid)),        # GATv2 lin_r (share_weights=False)
        "br":    init(keys[3],  (1, heads * hid)),
        "att":   init(keys[4],  (heads, hid)),              # per-head attention vector
        "bconv": init(keys[5],  (1, heads * hid)),          # GATv2 output bias
        "w1":    init(keys[6],  (2 * out_ch, 2 * out_ch)),  # linear1
        "b1":    init(keys[7],  (1, 2 * out_ch)),
        "w2":    init(keys[8],  (2 * out_ch, out_ch)),      # linear2
        "b2":    init(keys[9],  (1, out_ch)),
    }

    x = jax.random.normal(keys[10], (N, Fin), jnp.float32)
    h = jax.random.normal(keys[11], (N, out_ch), jnp.float32)

    # Small bidirectional ring graph; edge_index rows = (source, target).
    s = jnp.arange(N, dtype=jnp.int32)
    t = (s + 1) % N
    edge_index = jnp.stack([jnp.concatenate([s, t]), jnp.concatenate([t, s])])
    edge_weight = jnp.ones((edge_index.shape[1],), jnp.float32)  # unused by forward

    # TODO(synk): attention dropout on alpha (training-mode only) is omitted; dropout=0 / eval.
    out = tgat_cell(x, edge_index, edge_weight, h, params, heads=heads, hid=hid)
    jax.block_until_ready(out)
    assert out.shape == (N, out_ch) and out.dtype == jnp.float32
    assert bool(jnp.all(jnp.isfinite(out)))
    print("KERNEL_OK")
</pallas_src>

<mosaic_0001>
module attributes {stable_mosaic.version = 11 : i64} {
  func.func @tgat_cell_kernel(%arg0: i32, %arg1: memref<8x8xbf16, #tpu.memory_space<vmem>>, %arg2: memref<8x8xbf16, #tpu.memory_space<vmem>>, %arg3: memref<8x32xf32, #tpu.memory_space<vmem>>, %arg4: memref<8x64xbf16, #tpu.memory_space<vmem>>, %arg5: memref<1x64xf32, #tpu.memory_space<vmem>>, %arg6: memref<4x8xf32, #tpu.memory_space<smem>>, %arg7: memref<1x32xf32, #tpu.memory_space<vmem>>, %arg8: memref<64x64xbf16, #tpu.memory_space<vmem>>, %arg9: memref<1x64xf32, #tpu.memory_space<vmem>>, %arg10: memref<64x32xbf16, #tpu.memory_space<vmem>>, %arg11: memref<1x32xf32, #tpu.memory_space<vmem>>, %arg12: memref<8x32xf32, #tpu.memory_space<vmem>>, %arg13: memref<8x32xf32, #tpu.memory_space<vmem>>) attributes {dimension_semantics = [#tpu.dimension_semantics<parallel>], iteration_bounds = array<i64: 1>, scalar_prefetch = 0 : i64, scratch_operands = 1 : i64, tpu.core_type = #tpu.core_type<tc>, window_params = [{transform_indices = @transform_0, window_bounds = array<i64: 8, 8>}, {pipeline_mode = #tpu.pipeline_mode<synchronous>, transform_indices = @transform_1, window_bounds = array<i64: 8, 8>}, {transform_indices = @transform_2, window_bounds = array<i64: 8, 32>}, {pipeline_mode = #tpu.pipeline_mode<synchronous>, transform_indices = @transform_3, window_bounds = array<i64: 8, 64>}, {pipeline_mode = #tpu.pipeline_mode<synchronous>, transform_indices = @transform_4, window_bounds = array<i64: 1, 64>}, {transform_indices = @transform_5, window_bounds = array<i64: 4, 8>}, {pipeline_mode = #tpu.pipeline_mode<synchronous>, transform_indices = @transform_6, window_bounds = array<i64: 1, 32>}, {pipeline_mode = #tpu.pipeline_mode<synchronous>, transform_indices = @transform_7, window_bounds = array<i64: 64, 64>}, {pipeline_mode = #tpu.pipeline_mode<synchronous>, transform_indices = @transform_8, window_bounds = array<i64: 1, 64>}, {pipeline_mode = #tpu.pipeline_mode<synchronous>, transform_indices = @transform_9, window_bounds = array<i64: 64, 32>}, {pipeline_mode = #tpu.pipeline_mode<synchronous>, transform_indices = @transform_10, window_bounds = array<i64: 1, 32>}, {transform_indices = @transform_11, window_bounds = array<i64: 8, 32>}]} {
    %c0 = arith.constant 0 : index
    %c0_0 = arith.constant 0 : index
    %0 = vector.load %arg1[%c0, %c0_0] : memref<8x8xbf16, #tpu.memory_space<vmem>>, vector<8x8xbf16>
    %c0_1 = arith.constant 0 : index
    %c0_2 = arith.constant 0 : index
    %1 = vector.load %arg3[%c0_1, %c0_2] : memref<8x32xf32, #tpu.memory_space<vmem>>, vector<8x32xf32>
    %c0_3 = arith.constant 0 : index
    %c0_4 = arith.constant 0 : index
    %2 = vector.load %arg2[%c0_3, %c0_4] : memref<8x8xbf16, #tpu.memory_space<vmem>>, vector<8x8xbf16>
    %c0_5 = arith.constant 0 : index
    %c0_6 = arith.constant 0 : index
    %3 = vector.load %arg4[%c0_5, %c0_6] : memref<8x64xbf16, #tpu.memory_space<vmem>>, vector<8x64xbf16>
    %cst = arith.constant dense<0.000000e+00> : vector<8x64xf32>
    %4 = tpu.matmul %2, %3, %cst {dimension_numbers = #tpu.dot_dimension_numbers<[1], [0], [0], [1], [0, 0, 1, 1], [], []>} : vector<8x8xbf16>, vector<8x64xbf16>, vector<8x64xf32> -> vector<8x64xf32>
    %c0_7 = arith.constant 0 : index
    %c0_8 = arith.constant 0 : index
    %5 = vector.load %arg5[%c0_7, %c0_8] : memref<1x64xf32, #tpu.memory_space<vmem>>, vector<1x64xf32>
    %6 = vector.broadcast %5 : vector<1x64xf32> to vector<8x64xf32>
    %7 = arith.addf %4, %6 : vector<8x64xf32>
    %8 = vector.extract_strided_slice %7 {offsets = [0, 0], sizes = [8, 32], strides = [1, 1]} : vector<8x64xf32> to vector<8x32xf32>
    %9 = vector.extract_strided_slice %7 {offsets = [0, 32], sizes = [8, 32], strides = [1, 1]} : vector<8x64xf32> to vector<8x32xf32>
    %10 = tpu.transpose %8, [1, 0] : vector<8x32xf32> -> vector<32x8xf32>
    %11 = arith.truncf %8 : vector<8x32xf32> to vector<8x32xbf16>
    %cst_9 = arith.constant 0.000000e+00 : bf16
    %12 = vector.broadcast %cst_9 : bf16 to vector<8x8xbf16>
    %13 = arith.cmpf ogt, %0, %12 : vector<8x8xbf16>
    %cst_10 = arith.constant 0.000000e+00 : f32
    %14 = vector.broadcast %cst_10 : f32 to vector<8x8xf32>
    %15 = vector.extract_strided_slice %9 {offsets = [0, 0], sizes = [8, 1], strides = [1, 1]} : vector<8x32xf32> to vector<8x1xf32>
    %16 = vector.extract_strided_slice %10 {offsets = [0, 0], sizes = [1, 8], strides = [1, 1]} : vector<32x8xf32> to vector<1x8xf32>
    %17 = vector.broadcast %15 : vector<8x1xf32> to vector<8x8xf32>
    %18 = vector.broadcast %16 : vector<1x8xf32> to vector<8x8xf32>
    %19 = arith.addf %17, %18 : vector<8x8xf32>
    %cst_11 = arith.constant 0.000000e+00 : f32
    %20 = vector.broadcast %cst_11 : f32 to vector<8x8xf32>
    %21 = arith.cmpf ogt, %19, %20 : vector<8x8xf32>
    %cst_12 = arith.constant 2.000000e-01 : f32
    %22 = vector.broadcast %cst_12 : f32 to vector<8x8xf32>
    %23 = arith.mulf %22, %19 : vector<8x8xf32>
    %24 = arith.select %21, %19, %23 : vector<8x8xi1>, vector<8x8xf32>
    %c0_13 = arith.constant 0 : index
    %c0_14 = arith.constant 0 : index
    %25 = memref.load %arg6[%c0_13, %c0_14] : memref<4x8xf32, #tpu.memory_space<smem>>
    %26 = vector.broadcast %25 : f32 to vector<8x8xf32>
    %27 = arith.mulf %26, %24 : vector<8x8xf32>
    %28 = arith.addf %14, %27 : vector<8x8xf32>
    %29 = vector.extract_strided_slice %9 {offsets = [0, 1], sizes = [8, 1], strides = [1, 1]} : vector<8x32xf32> to vector<8x1xf32>
    %30 = vector.extract_strided_slice %10 {offsets = [1, 0], sizes = [1, 8], strides = [1, 1]} : vector<32x8xf32> to vector<1x8xf32>
    %31 = vector.broadcast %29 : vector<8x1xf32> to vector<8x8xf32>
    %32 = vector.broadcast %30 : vector<1x8xf32> to vector<8x8xf32>
    %33 = arith.addf %31, %32 : vector<8x8xf32>
    %cst_15 = arith.constant 0.000000e+00 : f32
    %34 = vector.broadcast %cst_15 : f32 to vector<8x8xf32>
    %35 = arith.cmpf ogt, %33, %34 : vector<8x8xf32>
    %cst_16 = arith.constant 2.000000e-01 : f32
    %36 = vector.broadcast %cst_16 : f32 to vector<8x8xf32>
    %37 = arith.mulf %36, %33 : vector<8x8xf32>
    %38 = arith.select %35, %33, %37 : vector<8x8xi1>, vector<8x8xf32>
    %c0_17 = arith.constant 0 : index
    %c1 = arith.constant 1 : index
    %39 = memref.load %arg6[%c0_17, %c1] : memref<4x8xf32, #tpu.memory_space<smem>>
    %40 = vector.broadcast %39 : f32 to vector<8x8xf32>
    %41 = arith.mulf %40, %38 : vector<8x8xf32>
    %42 = arith.addf %28, %41 : vector<8x8xf32>
    %43 = vector.extract_strided_slice %9 {offsets = [0, 2], sizes = [8, 1], strides = [1, 1]} : vector<8x32xf32> to vector<8x1xf32>
    %44 = vector.extract_strided_slice %10 {offsets = [2, 0], sizes = [1, 8], strides = [1, 1]} : vector<32x8xf32> to vector<1x8xf32>
    %45 = vector.broadcast %43 : vector<8x1xf32> to vector<8x8xf32>
    %46 = vector.broadcast %44 : vector<1x8xf32> to vector<8x8xf32>
    %47 = arith.addf %45, %46 : vector<8x8xf32>
    %cst_18 = arith.constant 0.000000e+00 : f32
    %48 = vector.broadcast %cst_18 : f32 to vector<8x8xf32>
    %49 = arith.cmpf ogt, %47, %48 : vector<8x8xf32>
    %cst_19 = arith.constant 2.000000e-01 : f32
    %50 = vector.broadcast %cst_19 : f32 to vector<8x8xf32>
    %51 = arith.mulf %50, %47 : vector<8x8xf32>
    %52 = arith.select %49, %47, %51 : vector<8x8xi1>, vector<8x8xf32>
    %c0_20 = arith.constant 0 : index
    %c2 = arith.constant 2 : index
    %53 = memref.load %arg6[%c0_20, %c2] : memref<4x8xf32, #tpu.memory_space<smem>>
    %54 = vector.broadcast %53 : f32 to vector<8x8xf32>
    %55 = arith.mulf %54, %52 : vector<8x8xf32>
    %56 = arith.addf %42, %55 : vector<8x8xf32>
    %57 = vector.extract_strided_slice %9 {offsets = [0, 3], sizes = [8, 1], strides = [1, 1]} : vector<8x32xf32> to vector<8x1xf32>
    %58 = vector.extract_strided_slice %10 {offsets = [3, 0], sizes = [1, 8], strides = [1, 1]} : vector<32x8xf32> to vector<1x8xf32>
    %59 = vector.broadcast %57 : vector<8x1xf32> to vector<8x8xf32>
    %60 = vector.broadcast %58 : vector<1x8xf32> to vector<8x8xf32>
    %61 = arith.addf %59, %60 : vector<8x8xf32>
    %cst_21 = arith.constant 0.000000e+00 : f32
    %62 = vector.broadcast %cst_21 : f32 to vector<8x8xf32>
    %63 = arith.cmpf ogt, %61, %62 : vector<8x8xf32>
    %cst_22 = arith.constant 2.000000e-01 : f32
    %64 = vector.broadcast %cst_22 : f32 to vector<8x8xf32>
    %65 = arith.mulf %64, %61 : vector<8x8xf32>
    %66 = arith.select %63, %61, %65 : vector<8x8xi1>, vector<8x8xf32>
    %c0_23 = arith.constant 0 : index
    %c3 = arith.constant 3 : index
    %67 = memref.load %arg6[%c0_23, %c3] : memref<4x8xf32, #tpu.memory_space<smem>>
    %68 = vector.broadcast %67 : f32 to vector<8x8xf32>
    %69 = arith.mulf %68, %66 : vector<8x8xf32>
    %70 = arith.addf %56, %69 : vector<8x8xf32>
    %71 = vector.extract_strided_slice %9 {offsets = [0, 4], sizes = [8, 1], strides = [1, 1]} : vector<8x32xf32> to vector<8x1xf32>
    %72 = vector.extract_strided_slice %10 {offsets = [4, 0], sizes = [1, 8], strides = [1, 1]} : vector<32x8xf32> to vector<1x8xf32>
    %73 = vector.broadcast %71 : vector<8x1xf32> to vector<8x8xf32>
    %74 = vector.broadcast %72 : vector<1x8xf32> to vector<8x8xf32>
    %75 = arith.addf %73, %74 : vector<8x8xf32>
    %cst_24 = arith.constant 0.000000e+00 : f32
    %76 = vector.broadcast %cst_24 : f32 to vector<8x8xf32>
    %77 = arith.cmpf ogt, %75, %76 : vector<8x8xf32>
    %cst_25 = arith.constant 2.000000e-01 : f32
    %78 = vector.broadcast %cst_25 : f32 to vector<8x8xf32>
    %79 = arith.mulf %78, %75 : vector<8x8xf32>
    %80 = arith.select %77, %75, %79 : vector<8x8xi1>, vector<8x8xf32>
    %c0_26 = arith.constant 0 : index
    %c4 = arith.constant 4 : index
    %81 = memref.load %arg6[%c0_26, %c4] : memref<4x8xf32, #tpu.memory_space<smem>>
    %82 = vector.broadcast %81 : f32 to vector<8x8xf32>
    %83 = arith.mulf %82, %80 : vector<8x8xf32>
    %84 = arith.addf %70, %83 : vector<8x8xf32>
    %85 = vector.extract_strided_slice %9 {offsets = [0, 5], sizes = [8, 1], strides = [1, 1]} : vector<8x32xf32> to vector<8x1xf32>
    %86 = vector.extract_strided_slice %10 {offsets = [5, 0], sizes = [1, 8], strides = [1, 1]} : vector<32x8xf32> to vector<1x8xf32>
    %87 = vector.broadcast %85 : vector<8x1xf32> to vector<8x8xf32>
    %88 = vector.broadcast %86 : vector<1x8xf32> to vector<8x8xf32>
    %89 = arith.addf %87, %88 : vector<8x8xf32>
    %cst_27 = arith.constant 0.000000e+00 : f32
    %90 = vector.broadcast %cst_27 : f32 to vector<8x8xf32>
    %91 = arith.cmpf ogt, %89, %90 : vector<8x8xf32>
    %cst_28 = arith.constant 2.000000e-01 : f32
    %92 = vector.broadcast %cst_28 : f32 to vector<8x8xf32>
    %93 = arith.mulf %92, %89 : vector<8x8xf32>
    %94 = arith.select %91, %89, %93 : vector<8x8xi1>, vector<8x8xf32>
    %c0_29 = arith.constant 0 : index
    %c5 = arith.constant 5 : index
    %95 = memref.load %arg6[%c0_29, %c5] : memref<4x8xf32, #tpu.memory_space<smem>>
    %96 = vector.broadcast %95 : f32 to vector<8x8xf32>
    %97 = arith.mulf %96, %94 : vector<8x8xf32>
    %98 = arith.addf %84, %97 : vector<8x8xf32>
    %99 = vector.extract_strided_slice %9 {offsets = [0, 6], sizes = [8, 1], strides = [1, 1]} : vector<8x32xf32> to vector<8x1xf32>
    %100 = vector.extract_strided_slice %10 {offsets = [6, 0], sizes = [1, 8], strides = [1, 1]} : vector<32x8xf32> to vector<1x8xf32>
    %101 = vector.broadcast %99 : vector<8x1xf32> to vector<8x8xf32>
    %102 = vector.broadcast %100 : vector<1x8xf32> to vector<8x8xf32>
    %103 = arith.addf %101, %102 : vector<8x8xf32>
    %cst_30 = arith.constant 0.000000e+00 : f32
    %104 = vector.broadcast %cst_30 : f32 to vector<8x8xf32>
    %105 = arith.cmpf ogt, %103, %104 : vector<8x8xf32>
    %cst_31 = arith.constant 2.000000e-01 : f32
    %106 = vector.broadcast %cst_31 : f32 to vector<8x8xf32>
    %107 = arith.mulf %106, %103 : vector<8x8xf32>
    %108 = arith.select %105, %103, %107 : vector<8x8xi1>, vector<8x8xf32>
    %c0_32 = arith.constant 0 : index
    %c6 = arith.constant 6 : index
    %109 = memref.load %arg6[%c0_32, %c6] : memref<4x8xf32, #tpu.memory_space<smem>>
    %110 = vector.broadcast %109 : f32 to vector<8x8xf32>
    %111 = arith.mulf %110, %108 : vector<8x8xf32>
    %112 = arith.addf %98, %111 : vector<8x8xf32>
    %113 = vector.extract_strided_slice %9 {offsets = [0, 7], sizes = [8, 1], strides = [1, 1]} : vector<8x32xf32> to vector<8x1xf32>
    %114 = vector.extract_strided_slice %10 {offsets = [7, 0], sizes = [1, 8], strides = [1, 1]} : vector<32x8xf32> to vector<1x8xf32>
    %115 = vector.broadcast %113 : vector<8x1xf32> to vector<8x8xf32>
    %116 = vector.broadcast %114 : vector<1x8xf32> to vector<8x8xf32>
    %117 = arith.addf %115, %116 : vector<8x8xf32>
    %cst_33 = arith.constant 0.000000e+00 : f32
    %118 = vector.broadcast %cst_33 : f32 to vector<8x8xf32>
    %119 = arith.cmpf ogt, %117, %118 : vector<8x8xf32>
    %cst_34 = arith.constant 2.000000e-01 : f32
    %120 = vector.broadcast %cst_34 : f32 to vector<8x8xf32>
    %121 = arith.mulf %120, %117 : vector<8x8xf32>
    %122 = arith.select %119, %117, %121 : vector<8x8xi1>, vector<8x8xf32>
    %c0_35 = arith.constant 0 : index
    %c7 = arith.constant 7 : index
    %123 = memref.load %arg6[%c0_35, %c7] : memref<4x8xf32, #tpu.memory_space<smem>>
    %124 = vector.broadcast %123 : f32 to vector<8x8xf32>
    %125 = arith.mulf %124, %122 : vector<8x8xf32>
    %126 = arith.addf %112, %125 : vector<8x8xf32>
    %cst_36 = arith.constant -1.000000e+30 : f32
    %127 = vector.broadcast %cst_36 : f32 to vector<8x8xf32>
    %128 = arith.select %13, %126, %127 : vector<8x8xi1>, vector<8x8xf32>
    %cst_37 = arith.constant dense<0xFF800000> : vector<8xf32>
    %129 = vector.multi_reduction <maximumf>, %128, %cst_37 [1] : vector<8x8xf32> to vector<8xf32>
    %130 = vector.shape_cast %129 : vector<8xf32> to vector<8x1xf32>
    %131 = vector.broadcast %130 : vector<8x1xf32> to vector<8x8xf32>
    %132 = arith.subf %128, %131 : vector<8x8xf32>
    %133 = math.exp %132 : vector<8x8xf32>
    %cst_38 = arith.constant dense<0.000000e+00> : vector<8xf32>
    %134 = vector.multi_reduction <add>, %133, %cst_38 [1] : vector<8x8xf32> to vector<8xf32>
    %135 = vector.shape_cast %134 : vector<8xf32> to vector<8x1xf32>
    %136 = vector.broadcast %135 : vector<8x1xf32> to vector<8x8xf32>
    %137 = arith.divf %133, %136 : vector<8x8xf32>
    %138 = vector.extract_strided_slice %11 {offsets = [0, 0], sizes = [8, 8], strides = [1, 1]} : vector<8x32xbf16> to vector<8x8xbf16>
    %139 = arith.truncf %137 : vector<8x8xf32> to vector<8x8xbf16>
    %cst_39 = arith.constant dense<0.000000e+00> : vector<8x8xf32>
    %140 = tpu.matmul %139, %138, %cst_39 {dimension_numbers = #tpu.dot_dimension_numbers<[1], [0], [0], [1], [0, 0, 1, 1], [], []>} : vector<8x8xbf16>, vector<8x8xbf16>, vector<8x8xf32> -> vector<8x8xf32>
    %c0_40 = arith.constant 0 : index
    %c0_41 = arith.constant 0 : index
    %141 = vector.load %arg13[%c0_40, %c0_41] : memref<8x32xf32, #tpu.memory_space<vmem>>, vector<8x8xf32>
    tpu.vector_store %arg13[%c0_40, %c0_41], %140 {strides = array<i32>} : memref<8x32xf32, #tpu.memory_space<vmem>>, vector<8x8xf32>,
    %cst_42 = arith.constant 0.000000e+00 : f32
    %142 = vector.broadcast %cst_42 : f32 to vector<8x8xf32>
    %143 = vector.extract_strided_slice %9 {offsets = [0, 8], sizes = [8, 1], strides = [1, 1]} : vector<8x32xf32> to vector<8x1xf32>
    %144 = vector.extract_strided_slice %10 {offsets = [8, 0], sizes = [1, 8], strides = [1, 1]} : vector<32x8xf32> to vector<1x8xf32>
    %145 = vector.broadcast %143 : vector<8x1xf32> to vector<8x8xf32>
    %146 = vector.broadcast %144 : vector<1x8xf32> to vector<8x8xf32>
    %147 = arith.addf %145, %146 : vector<8x8xf32>
    %cst_43 = arith.constant 0.000000e+00 : f32
    %148 = vector.broadcast %cst_43 : f32 to vector<8x8xf32>
    %149 = arith.cmpf ogt, %147, %148 : vector<8x8xf32>
    %cst_44 = arith.constant 2.000000e-01 : f32
    %150 = vector.broadcast %cst_44 : f32 to vector<8x8xf32>
    %151 = arith.mulf %150, %147 : vector<8x8xf32>
    %152 = arith.select %149, %147, %151 : vector<8x8xi1>, vector<8x8xf32>
    %c1_45 = arith.constant 1 : index
    %c0_46 = arith.constant 0 : index
    %153 = memref.load %arg6[%c1_45, %c0_46] : memref<4x8xf32, #tpu.memory_space<smem>>
    %154 = vector.broadcast %153 : f32 to vector<8x8xf32>
    %155 = arith.mulf %154, %152 : vector<8x8xf32>
    %156 = arith.addf %142, %155 : vector<8x8xf32>
    %157 = vector.extract_strided_slice %9 {offsets = [0, 9], sizes = [8, 1], strides = [1, 1]} : vector<8x32xf32> to vector<8x1xf32>
    %158 = vector.extract_strided_slice %10 {offsets = [9, 0], sizes = [1, 8], strides = [1, 1]} : vector<32x8xf32> to vector<1x8xf32>
    %159 = vector.broadcast %157 : vector<8x1xf32> to vector<8x8xf32>
    %160 = vector.broadcast %158 : vector<1x8xf32> to vector<8x8xf32>
    %161 = arith.addf %159, %160 : vector<8x8xf32>
    %cst_47 = arith.constant 0.000000e+00 : f32
    %162 = vector.broadcast %cst_47 : f32 to vector<8x8xf32>
    %163 = arith.cmpf ogt, %161, %162 : vector<8x8xf32>
    %cst_48 = arith.constant 2.000000e-01 : f32
    %164 = vector.broadcast %cst_48 : f32 to vector<8x8xf32>
    %165 = arith.mulf %164, %161 : vector<8x8xf32>
    %166 = arith.select %163, %161, %165 : vector<8x8xi1>, vector<8x8xf32>
    %c1_49 = arith.constant 1 : index
    %c1_50 = arith.constant 1 : index
    %167 = memref.load %arg6[%c1_49, %c1_50] : memref<4x8xf32, #tpu.memory_space<smem>>
    %168 = vector.broadcast %167 : f32 to vector<8x8xf32>
    %169 = arith.mulf %168, %166 : vector<8x8xf32>
    %170 = arith.addf %156, %169 : vector<8x8xf32>
    %171 = vector.extract_strided_slice %9 {offsets = [0, 10], sizes = [8, 1], strides = [1, 1]} : vector<8x32xf32> to vector<8x1xf32>
    %172 = vector.extract_strided_slice %10 {offsets = [10, 0], sizes = [1, 8], strides = [1, 1]} : vector<32x8xf32> to vector<1x8xf32>
    %173 = vector.broadcast %171 : vector<8x1xf32> to vector<8x8xf32>
    %174 = vector.broadcast %172 : vector<1x8xf32> to vector<8x8xf32>
    %175 = arith.addf %173, %174 : vector<8x8xf32>
    %cst_51 = arith.constant 0.000000e+00 : f32
    %176 = vector.broadcast %cst_51 : f32 to vector<8x8xf32>
    %177 = arith.cmpf ogt, %175, %176 : vector<8x8xf32>
    %cst_52 = arith.constant 2.000000e-01 : f32
    %178 = vector.broadcast %cst_52 : f32 to vector<8x8xf32>
    %179 = arith.mulf %178, %175 : vector<8x8xf32>
    %180 = arith.select %177, %175, %179 : vector<8x8xi1>, vector<8x8xf32>
    %c1_53 = arith.constant 1 : index
    %c2_54 = arith.constant 2 : index
    %181 = memref.load %arg6[%c1_53, %c2_54] : memref<4x8xf32, #tpu.memory_space<smem>>
    %182 = vector.broadcast %181 : f32 to vector<8x8xf32>
    %183 = arith.mulf %182, %180 : vector<8x8xf32>
    %184 = arith.addf %170, %183 : vector<8x8xf32>
    %185 = vector.extract_strided_slice %9 {offsets = [0, 11], sizes = [8, 1], strides = [1, 1]} : vector<8x32xf32> to vector<8x1xf32>
    %186 = vector.extract_strided_slice %10 {offsets = [11, 0], sizes = [1, 8], strides = [1, 1]} : vector<32x8xf32> to vector<1x8xf32>
    %187 = vector.broadcast %185 : vector<8x1xf32> to vector<8x8xf32>
    %188 = vector.broadcast %186 : vector<1x8xf32> to vector<8x8xf32>
    %189 = arith.addf %187, %188 : vector<8x8xf32>
    %cst_55 = arith.constant 0.000000e+00 : f32
    %190 = vector.broadcast %cst_55 : f32 to vector<8x8xf32>
    %191 = arith.cmpf ogt, %189, %190 : vector<8x8xf32>
    %cst_56 = arith.constant 2.000000e-01 : f32
    %192 = vector.broadcast %cst_56 : f32 to vector<8x8xf32>
    %193 = arith.mulf %192, %189 : vector<8x8xf32>
    %194 = arith.select %191, %189, %193 : vector<8x8xi1>, vector<8x8xf32>
    %c1_57 = arith.constant 1 : index
    %c3_58 = arith.constant 3 : index
    %195 = memref.load %arg6[%c1_57, %c3_58] : memref<4x8xf32, #tpu.memory_space<smem>>
    %196 = vector.broadcast %195 : f32 to vector<8x8xf32>
    %197 = arith.mulf %196, %194 : vector<8x8xf32>
    %198 = arith.addf %184, %197 : vector<8x8xf32>
    %199 = vector.extract_strided_slice %9 {offsets = [0, 12], sizes = [8, 1], strides = [1, 1]} : vector<8x32xf32> to vector<8x1xf32>
    %200 = vector.extract_strided_slice %10 {offsets = [12, 0], sizes = [1, 8], strides = [1, 1]} : vector<32x8xf32> to vector<1x8xf32>
    %201 = vector.broadcast %199 : vector<8x1xf32> to vector<8x8xf32>
    %202 = vector.broadcast %200 : vector<1x8xf32> to vector<8x8xf32>
    %203 = arith.addf %201, %202 : vector<8x8xf32>
    %cst_59 = arith.constant 0.000000e+00 : f32
    %204 = vector.broadcast %cst_59 : f32 to vector<8x8xf32>
    %205 = arith.cmpf ogt, %203, %204 : vector<8x8xf32>
    %cst_60 = arith.constant 2.000000e-01 : f32
    %206 = vector.broadcast %cst_60 : f32 to vector<8x8xf32>
    %207 = arith.mulf %206, %203 : vector<8x8xf32>
    %208 = arith.select %205, %203, %207 : vector<8x8xi1>, vector<8x8xf32>
    %c1_61 = arith.constant 1 : index
    %c4_62 = arith.constant 4 : index
    %209 = memref.load %arg6[%c1_61, %c4_62] : memref<4x8xf32, #tpu.memory_space<smem>>
    %210 = vector.broadcast %209 : f32 to vector<8x8xf32>
    %211 = arith.mulf %210, %208 : vector<8x8xf32>
    %212 = arith.addf %198, %211 : vector<8x8xf32>
    %213 = vector.extract_strided_slice %9 {offsets = [0, 13], sizes = [8, 1], strides = [1, 1]} : vector<8x32xf32> to vector<8x1xf32>
    %214 = vector.extract_strided_slice %10 {offsets = [13, 0], sizes = [1, 8], strides = [1, 1]} : vector<32x8xf32> to vector<1x8xf32>
    %215 = vector.broadcast %213 : vector<8x1xf32> to vector<8x8xf32>
    %216 = vector.broadcast %214 : vector<1x8xf32> to vector<8x8xf32>
    %217 = arith.addf %215, %216 : vector<8x8xf32>
    %cst_63 = arith.constant 0.000000e+00 : f32
    %218 = vector.broadcast %cst_63 : f32 to vector<8x8xf32>
    %219 = arith.cmpf ogt, %217, %218 : vector<8x8xf32>
    %cst_64 = arith.constant 2.000000e-01 : f32
    %220 = vector.broadcast %cst_64 : f32 to vector<8x8xf32>
    %221 = arith.mulf %220, %217 : vector<8x8xf32>
    %222 = arith.select %219, %217, %221 : vector<8x8xi1>, vector<8x8xf32>
    %c1_65 = arith.constant 1 : index
    %c5_66 = arith.constant 5 : index
    %223 = memref.load %arg6[%c1_65, %c5_66] : memref<4x8xf32, #tpu.memory_space<smem>>
    %224 = vector.broadcast %223 : f32 to vector<8x8xf32>
    %225 = arith.mulf %224, %222 : vector<8x8xf32>
    %226 = arith.addf %212, %225 : vector<8x8xf32>
    %227 = vector.extract_strided_slice %9 {offsets = [0, 14], sizes = [8, 1], strides = [1, 1]} : vector<8x32xf32> to vector<8x1xf32>
    %228 = vector.extract_strided_slice %10 {offsets = [14, 0], sizes = [1, 8], strides = [1, 1]} : vector<32x8xf32> to vector<1x8xf32>
    %229 = vector.broadcast %227 : vector<8x1xf32> to vector<8x8xf32>
    %230 = vector.broadcast %228 : vector<1x8xf32> to vector<8x8xf32>
    %231 = arith.addf %229, %230 : vector<8x8xf32>
    %cst_67 = arith.constant 0.000000e+00 : f32
    %232 = vector.broadcast %cst_67 : f32 to vector<8x8xf32>
    %233 = arith.cmpf ogt, %231, %232 : vector<8x8xf32>
    %cst_68 = arith.constant 2.000000e-01 : f32
    %234 = vector.broadcast %cst_68 : f32 to vector<8x8xf32>
    %235 = arith.mulf %234, %231 : vector<8x8xf32>
    %236 = arith.select %233, %231, %235 : vector<8x8xi1>, vector<8x8xf32>
    %c1_69 = arith.constant 1 : index
    %c6_70 = arith.constant 6 : index
    %237 = memref.load %arg6[%c1_69, %c6_70] : memref<4x8xf32, #tpu.memory_space<smem>>
    %238 = vector.broadcast %237 : f32 to vector<8x8xf32>
    %239 = arith.mulf %238, %236 : vector<8x8xf32>
    %240 = arith.addf %226, %239 : vector<8x8xf32>
    %241 = vector.extract_strided_slice %9 {offsets = [0, 15], sizes = [8, 1], strides = [1, 1]} : vector<8x32xf32> to vector<8x1xf32>
    %242 = vector.extract_strided_slice %10 {offsets = [15, 0], sizes = [1, 8], strides = [1, 1]} : vector<32x8xf32> to vector<1x8xf32>
    %243 = vector.broadcast %241 : vector<8x1xf32> to vector<8x8xf32>
    %244 = vector.broadcast %242 : vector<1x8xf32> to vector<8x8xf32>
    %245 = arith.addf %243, %244 : vector<8x8xf32>
    %cst_71 = arith.constant 0.000000e+00 : f32
    %246 = vector.broadcast %cst_71 : f32 to vector<8x8xf32>
    %247 = arith.cmpf ogt, %245, %246 : vector<8x8xf32>
    %cst_72 = arith.constant 2.000000e-01 : f32
    %248 = vector.broadcast %cst_72 : f32 to vector<8x8xf32>
    %249 = arith.mulf %248, %245 : vector<8x8xf32>
    %250 = arith.select %247, %245, %249 : vector<8x8xi1>, vector<8x8xf32>
    %c1_73 = arith.constant 1 : index
    %c7_74 = arith.constant 7 : index
    %251 = memref.load %arg6[%c1_73, %c7_74] : memref<4x8xf32, #tpu.memory_space<smem>>
    %252 = vector.broadcast %251 : f32 to vector<8x8xf32>
    %253 = arith.mulf %252, %250 : vector<8x8xf32>
    %254 = arith.addf %240, %253 : vector<8x8xf32>
    %cst_75 = arith.constant -1.000000e+30 : f32
    %255 = vector.broadcast %cst_75 : f32 to vector<8x8xf32>
    %256 = arith.select %13, %254, %255 : vector<8x8xi1>, vector<8x8xf32>
    %cst_76 = arith.constant dense<0xFF800000> : vector<8xf32>
    %257 = vector.multi_reduction <maximumf>, %256, %cst_76 [1] : vector<8x8xf32> to vector<8xf32>
    %258 = vector.shape_cast %257 : vector<8xf32> to vector<8x1xf32>
    %259 = vector.broadcast %258 : vector<8x1xf32> to vector<8x8xf32>
    %260 = arith.subf %256, %259 : vector<8x8xf32>
    %261 = math.exp %260 : vector<8x8xf32>
    %cst_77 = arith.constant dense<0.000000e+00> : vector<8xf32>
    %262 = vector.multi_reduction <add>, %261, %cst_77 [1] : vector<8x8xf32> to vector<8xf32>
    %263 = vector.shape_cast %262 : vector<8xf32> to vector<8x1xf32>
    %264 = vector.broadcast %263 : vector<8x1xf32> to vector<8x8xf32>
    %265 = arith.divf %261, %264 : vector<8x8xf32>
    %266 = vector.extract_strided_slice %11 {offsets = [0, 8], sizes = [8, 8], strides = [1, 1]} : vector<8x32xbf16> to vector<8x8xbf16>
    %267 = arith.truncf %265 : vector<8x8xf32> to vector<8x8xbf16>
    %cst_78 = arith.constant dense<0.000000e+00> : vector<8x8xf32>
    %268 = tpu.matmul %267, %266, %cst_78 {dimension_numbers = #tpu.dot_dimension_numbers<[1], [0], [0], [1], [0, 0, 1, 1], [], []>} : vector<8x8xbf16>, vector<8x8xbf16>, vector<8x8xf32> -> vector<8x8xf32>
    %c0_79 = arith.constant 0 : index
    %c8 = arith.constant 8 : index
    %269 = vector.load %arg13[%c0_79, %c8] : memref<8x32xf32, #tpu.memory_space<vmem>>, vector<8x8xf32>
    tpu.vector_store %arg13[%c0_79, %c8], %268 {strides = array<i32>} : memref<8x32xf32, #tpu.memory_space<vmem>>, vector<8x8xf32>,
    %cst_80 = arith.constant 0.000000e+00 : f32
    %270 = vector.broadcast %cst_80 : f32 to vector<8x8xf32>
    %271 = vector.extract_strided_slice %9 {offsets = [0, 16], sizes = [8, 1], strides = [1, 1]} : vector<8x32xf32> to vector<8x1xf32>
    %272 = vector.extract_strided_slice %10 {offsets = [16, 0], sizes = [1, 8], strides = [1, 1]} : vector<32x8xf32> to vector<1x8xf32>
    %273 = vector.broadcast %271 : vector<8x1xf32> to vector<8x8xf32>
    %274 = vector.broadcast %272 : vector<1x8xf32> to vector<8x8xf32>
    %275 = arith.addf %273, %274 : vector<8x8xf32>
    %cst_81 = arith.constant 0.000000e+00 : f32
    %276 = vector.broadcast %cst_81 : f32 to vector<8x8xf32>
    %277 = arith.cmpf ogt, %275, %276 : vector<8x8xf32>
    %cst_82 = arith.constant 2.000000e-01 : f32
    %278 = vector.broadcast %cst_82 : f32 to vector<8x8xf32>
    %279 = arith.mulf %278, %275 : vector<8x8xf32>
    %280 = arith.select %277, %275, %279 : vector<8x8xi1>, vector<8x8xf32>
    %c2_83 = arith.constant 2 : index
    %c0_84 = arith.constant 0 : index
    %281 = memref.load %arg6[%c2_83, %c0_84] : memref<4x8xf32, #tpu.memory_space<smem>>
    %282 = vector.broadcast %281 : f32 to vector<8x8xf32>
    %283 = arith.mulf %282, %280 : vector<8x8xf32>
    %284 = arith.addf %270, %283 : vector<8x8xf32>
    %285 = vector.extract_strided_slice %9 {offsets = [0, 17], sizes = [8, 1], strides = [1, 1]} : vector<8x32xf32> to vector<8x1xf32>
    %286 = vector.extract_strided_slice %10 {offsets = [17, 0], sizes = [1, 8], strides = [1, 1]} : vector<32x8xf32> to vector<1x8xf32>
    %287 = vector.broadcast %285 : vector<8x1xf32> to vector<8x8xf32>
    %288 = vector.broadcast %286 : vector<1x8xf32> to vector<8x8xf32>
    %289 = arith.addf %287, %288 : vector<8x8xf32>
    %cst_85 = arith.constant 0.000000e+00 : f32
    %290 = vector.broadcast %cst_85 : f32 to vector<8x8xf32>
    %291 = arith.cmpf ogt, %289, %290 : vector<8x8xf32>
    %cst_86 = arith.constant 2.000000e-01 : f32
    %292 = vector.broadcast %cst_86 : f32 to vector<8x8xf32>
    %293 = arith.mulf %292, %289 : vector<8x8xf32>
    %294 = arith.select %291, %289, %293 : vector<8x8xi1>, vector<8x8xf32>
    %c2_87 = arith.constant 2 : index
    %c1_88 = arith.constant 1 : index
    %295 = memref.load %arg6[%c2_87, %c1_88] : memref<4x8xf32, #tpu.memory_space<smem>>
    %296 = vector.broadcast %295 : f32 to vector<8x8xf32>
    %297 = arith.mulf %296, %294 : vector<8x8xf32>
    %298 = arith.addf %284, %297 : vector<8x8xf32>
    %299 = vector.extract_strided_slice %9 {offsets = [0, 18], sizes = [8, 1], strides = [1, 1]} : vector<8x32xf32> to vector<8x1xf32>
    %300 = vector.extract_strided_slice %10 {offsets = [18, 0], sizes = [1, 8], strides = [1, 1]} : vector<32x8xf32> to vector<1x8xf32>
    %301 = vector.broadcast %299 : vector<8x1xf32> to vector<8x8xf32>
    %302 = vector.broadcast %300 : vector<1x8xf32> to vector<8x8xf32>
    %303 = arith.addf %301, %302 : vector<8x8xf32>
    %cst_89 = arith.constant 0.000000e+00 : f32
    %304 = vector.broadcast %cst_89 : f32 to vector<8x8xf32>
    %305 = arith.cmpf ogt, %303, %304 : vector<8x8xf32>
    %cst_90 = arith.constant 2.000000e-01 : f32
    %306 = vector.broadcast %cst_90 : f32 to vector<8x8xf32>
    %307 = arith.mulf %306, %303 : vector<8x8xf32>
    %308 = arith.select %305, %303, %307 : vector<8x8xi1>, vector<8x8xf32>
    %c2_91 = arith.constant 2 : index
    %c2_92 = arith.constant 2 : index
    %309 = memref.load %arg6[%c2_91, %c2_92] : memref<4x8xf32, #tpu.memory_space<smem>>
    %310 = vector.broadcast %309 : f32 to vector<8x8xf32>
    %311 = arith.mulf %310, %308 : vector<8x8xf32>
    %312 = arith.addf %298, %311 : vector<8x8xf32>
    %313 = vector.extract_strided_slice %9 {offsets = [0, 19], sizes = [8, 1], strides = [1, 1]} : vector<8x32xf32> to vector<8x1xf32>
    %314 = vector.extract_strided_slice %10 {offsets = [19, 0], sizes = [1, 8], strides = [1, 1]} : vector<32x8xf32> to vector<1x8xf32>
    %315 = vector.broadcast %313 : vector<8x1xf32> to vector<8x8xf32>
    %316 = vector.broadcast %314 : vector<1x8xf32> to vector<8x8xf32>
    %317 = arith.addf %315, %316 : vector<8x8xf32>
    %cst_93 = arith.constant 0.000000e+00 : f32
    %318 = vector.broadcast %cst_93 : f32 to vector<8x8xf32>
    %319 = arith.cmpf ogt, %317, %318 : vector<8x8xf32>
    %cst_94 = arith.constant 2.000000e-01 : f32
    %320 = vector.broadcast %cst_94 : f32 to vector<8x8xf32>
    %321 = arith.mulf %320, %317 : vector<8x8xf32>
    %322 = arith.select %319, %317, %321 : vector<8x8xi1>, vector<8x8xf32>
    %c2_95 = arith.constant 2 : index
    %c3_96 = arith.constant 3 : index
    %323 = memref.load %arg6[%c2_95, %c3_96] : memref<4x8xf32, #tpu.memory_space<smem>>
    %324 = vector.broadcast %323 : f32 to vector<8x8xf32>
    %325 = arith.mulf %324, %322 : vector<8x8xf32>
    %326 = arith.addf %312, %325 : vector<8x8xf32>
    %327 = vector.extract_strided_slice %9 {offsets = [0, 20], sizes = [8, 1], strides = [1, 1]} : vector<8x32xf32> to vector<8x1xf32>
    %328 = vector.extract_strided_slice %10 {offsets = [20, 0], sizes = [1, 8], strides = [1, 1]} : vector<32x8xf32> to vector<1x8xf32>
    %329 = vector.broadcast %327 : vector<8x1xf32> to vector<8x8xf32>
    %330 = vector.broadcast %328 : vector<1x8xf32> to vector<8x8xf32>
    %331 = arith.addf %329, %330 : vector<8x8xf32>
    %cst_97 = arith.constant 0.000000e+00 : f32
    %332 = vector.broadcast %cst_97 : f32 to vector<8x8xf32>
    %333 = arith.cmpf ogt, %331, %332 : vector<8x8xf32>
    %cst_98 = arith.constant 2.000000e-01 : f32
    %334 = vector.broadcast %cst_98 : f32 to vector<8x8xf32>
    %335 = arith.mulf %334, %331 : vector<8x8xf32>
    %336 = arith.select %333, %331, %335 : vector<8x8xi1>, vector<8x8xf32>
    %c2_99 = arith.constant 2 : index
    %c4_100 = arith.constant 4 : index
    %337 = memref.load %arg6[%c2_99, %c4_100] : memref<4x8xf32, #tpu.memory_space<smem>>
    %338 = vector.broadcast %337 : f32 to vector<8x8xf32>
    %339 = arith.mulf %338, %336 : vector<8x8xf32>
    %340 = arith.addf %326, %339 : vector<8x8xf32>
    %341 = vector.extract_strided_slice %9 {offsets = [0, 21], sizes = [8, 1], strides = [1, 1]} : vector<8x32xf32> to vector<8x1xf32>
    %342 = vector.extract_strided_slice %10 {offsets = [21, 0], sizes = [1, 8], strides = [1, 1]} : vector<32x8xf32> to vector<1x8xf32>
    %343 = vector.broadcast %341 : vector<8x1xf32> to vector<8x8xf32>
    %344 = vector.broadcast %342 : vector<1x8xf32> to vector<8x8xf32>
    %345 = arith.addf %343, %344 : vector<8x8xf32>
    %cst_101 = arith.constant 0.000000e+00 : f32
    %346 = vector.broadcast %cst_101 : f32 to vector<8x8xf32>
    %347 = arith.cmpf ogt, %345, %346 : vector<8x8xf32>
    %cst_102 = arith.constant 2.000000e-01 : f32
    %348 = vector.broadcast %cst_102 : f32 to vector<8x8xf32>
    %349 = arith.mulf %348, %345 : vector<8x8xf32>
    %350 = arith.select %347, %345, %349 : vector<8x8xi1>, vector<8x8xf32>
    %c2_103 = arith.constant 2 : index
    %c5_104 = arith.constant 5 : index
    %351 = memref.load %arg6[%c2_103, %c5_104] : memref<4x8xf32, #tpu.memory_space<smem>>
    %352 = vector.broadcast %351 : f32 to vector<8x8xf32>
    %353 = arith.mulf %352, %350 : vector<8x8xf32>
    %354 = arith.addf %340, %353 : vector<8x8xf32>
    %355 = vector.extract_strided_slice %9 {offsets = [0, 22], sizes = [8, 1], strides = [1, 1]} : vector<8x32xf32> to vector<8x1xf32>
    %356 = vector.extract_strided_slice %10 {offsets = [22, 0], sizes = [1, 8], strides = [1, 1]} : vector<32x8xf32> to vector<1x8xf32>
    %357 = vector.broadcast %355 : vector<8x1xf32> to vector<8x8xf32>
    %358 = vector.broadcast %356 : vector<1x8xf32> to vector<8x8xf32>
    %359 = arith.addf %357, %358 : vector<8x8xf32>
    %cst_105 = arith.constant 0.000000e+00 : f32
    %360 = vector.broadcast %cst_105 : f32 to vector<8x8xf32>
    %361 = arith.cmpf ogt, %359, %360 : vector<8x8xf32>
    %cst_106 = arith.constant 2.000000e-01 : f32
    %362 = vector.broadcast %cst_106 : f32 to vector<8x8xf32>
    %363 = arith.mulf %362, %359 : vector<8x8xf32>
    %364 = arith.select %361, %359, %363 : vector<8x8xi1>, vector<8x8xf32>
    %c2_107 = arith.constant 2 : index
    %c6_108 = arith.constant 6 : index
    %365 = memref.load %arg6[%c2_107, %c6_108] : memref<4x8xf32, #tpu.memory_space<smem>>
    %366 = vector.broadcast %365 : f32 to vector<8x8xf32>
    %367 = arith.mulf %366, %364 : vector<8x8xf32>
    %368 = arith.addf %354, %367 : vector<8x8xf32>
    %369 = vector.extract_strided_slice %9 {offsets = [0, 23], sizes = [8, 1], strides = [1, 1]} : vector<8x32xf32> to vector<8x1xf32>
    %370 = vector.extract_strided_slice %10 {offsets = [23, 0], sizes = [1, 8], strides = [1, 1]} : vector<32x8xf32> to vector<1x8xf32>
    %371 = vector.broadcast %369 : vector<8x1xf32> to vector<8x8xf32>
    %372 = vector.broadcast %370 : vector<1x8xf32> to vector<8x8xf32>
    %373 = arith.addf %371, %372 : vector<8x8xf32>
    %cst_109 = arith.constant 0.000000e+00 : f32
    %374 = vector.broadcast %cst_109 : f32 to vector<8x8xf32>
    %375 = arith.cmpf ogt, %373, %374 : vector<8x8xf32>
    %cst_110 = arith.constant 2.000000e-01 : f32
    %376 = vector.broadcast %cst_110 : f32 to vector<8x8xf32>
    %377 = arith.mulf %376, %373 : vector<8x8xf32>
    %378 = arith.select %375, %373, %377 : vector<8x8xi1>, vector<8x8xf32>
    %c2_111 = arith.constant 2 : index
    %c7_112 = arith.constant 7 : index
    %379 = memref.load %arg6[%c2_111, %c7_112] : memref<4x8xf32, #tpu.memory_space<smem>>
    %380 = vector.broadcast %379 : f32 to vector<8x8xf32>
    %381 = arith.mulf %380, %378 : vector<8x8xf32>
    %382 = arith.addf %368, %381 : vector<8x8xf32>
    %cst_113 = arith.constant -1.000000e+30 : f32
    %383 = vector.broadcast %cst_113 : f32 to vector<8x8xf32>
    %384 = arith.select %13, %382, %383 : vector<8x8xi1>, vector<8x8xf32>
    %cst_114 = arith.constant dense<0xFF800000> : vector<8xf32>
    %385 = vector.multi_reduction <maximumf>, %384, %cst_114 [1] : vector<8x8xf32> to vector<8xf32>
    %386 = vector.shape_cast %385 : vector<8xf32> to vector<8x1xf32>
    %387 = vector.broadcast %386 : vector<8x1xf32> to vector<8x8xf32>
    %388 = arith.subf %384, %387 : vector<8x8xf32>
    %389 = math.exp %388 : vector<8x8xf32>
    %cst_115 = arith.constant dense<0.000000e+00> : vector<8xf32>
    %390 = vector.multi_reduction <add>, %389, %cst_115 [1] : vector<8x8xf32> to vector<8xf32>
    %391 = vector.shape_cast %390 : vector<8xf32> to vector<8x1xf32>
    %392 = vector.broadcast %391 : vector<8x1xf32> to vector<8x8xf32>
    %393 = arith.divf %389, %392 : vector<8x8xf32>
    %394 = vector.extract_strided_slice %11 {offsets = [0, 16], sizes = [8, 8], strides = [1, 1]} : vector<8x32xbf16> to vector<8x8xbf16>
    %395 = arith.truncf %393 : vector<8x8xf32> to vector<8x8xbf16>
    %cst_116 = arith.constant dense<0.000000e+00> : vector<8x8xf32>
    %396 = tpu.matmul %395, %394, %cst_116 {dimension_numbers = #tpu.dot_dimension_numbers<[1], [0], [0], [1], [0, 0, 1, 1], [], []>} : vector<8x8xbf16>, vector<8x8xbf16>, vector<8x8xf32> -> vector<8x8xf32>
    %c0_117 = arith.constant 0 : index
    %c16 = arith.constant 16 : index
    %397 = vector.load %arg13[%c0_117, %c16] : memref<8x32xf32, #tpu.memory_space<vmem>>, vector<8x8xf32>
    tpu.vector_store %arg13[%c0_117, %c16], %396 {strides = array<i32>} : memref<8x32xf32, #tpu.memory_space<vmem>>, vector<8x8xf32>,
    %cst_118 = arith.constant 0.000000e+00 : f32
    %398 = vector.broadcast %cst_118 : f32 to vector<8x8xf32>
    %399 = vector.extract_strided_slice %9 {offsets = [0, 24], sizes = [8, 1], strides = [1, 1]} : vector<8x32xf32> to vector<8x1xf32>
    %400 = vector.extract_strided_slice %10 {offsets = [24, 0], sizes = [1, 8], strides = [1, 1]} : vector<32x8xf32> to vector<1x8xf32>
    %401 = vector.broadcast %399 : vector<8x1xf32> to vector<8x8xf32>
    %402 = vector.broadcast %400 : vector<1x8xf32> to vector<8x8xf32>
    %403 = arith.addf %401, %402 : vector<8x8xf32>
    %cst_119 = arith.constant 0.000000e+00 : f32
    %404 = vector.broadcast %cst_119 : f32 to vector<8x8xf32>
    %405 = arith.cmpf ogt, %403, %404 : vector<8x8xf32>
    %cst_120 = arith.constant 2.000000e-01 : f32
    %406 = vector.broadcast %cst_120 : f32 to vector<8x8xf32>
    %407 = arith.mulf %406, %403 : vector<8x8xf32>
    %408 = arith.select %405, %403, %407 : vector<8x8xi1>, vector<8x8xf32>
    %c3_121 = arith.constant 3 : index
    %c0_122 = arith.constant 0 : index
    %409 = memref.load %arg6[%c3_121, %c0_122] : memref<4x8xf32, #tpu.memory_space<smem>>
    %410 = vector.broadcast %409 : f32 to vector<8x8xf32>
    %411 = arith.mulf %410, %408 : vector<8x8xf32>
    %412 = arith.addf %398, %411 : vector<8x8xf32>
    %413 = vector.extract_strided_slice %9 {offsets = [0, 25], sizes = [8, 1], strides = [1, 1]} : vector<8x32xf32> to vector<8x1xf32>
    %414 = vector.extract_strided_slice %10 {offsets = [25, 0], sizes = [1, 8], strides = [1, 1]} : vector<32x8xf32> to vector<1x8xf32>
    %415 = vector.broadcast %413 : vector<8x1xf32> to vector<8x8xf32>
    %416 = vector.broadcast %414 : vector<1x8xf32> to vector<8x8xf32>
    %417 = arith.addf %415, %416 : vector<8x8xf32>
    %cst_123 = arith.constant 0.000000e+00 : f32
    %418 = vector.broadcast %cst_123 : f32 to vector<8x8xf32>
    %419 = arith.cmpf ogt, %417, %418 : vector<8x8xf32>
    %cst_124 = arith.constant 2.000000e-01 : f32
    %420 = vector.broadcast %cst_124 : f32 to vector<8x8xf32>
    %421 = arith.mulf %420, %417 : vector<8x8xf32>
    %422 = arith.select %419, %417, %421 : vector<8x8xi1>, vector<8x8xf32>
    %c3_125 = arith.constant 3 : index
    %c1_126 = arith.constant 1 : index
    %423 = memref.load %arg6[%c3_125, %c1_126] : memref<4x8xf32, #tpu.memory_space<smem>>
    %424 = vector.broadcast %423 : f32 to vector<8x8xf32>
    %425 = arith.mulf %424, %422 : vector<8x8xf32>
    %426 = arith.addf %412, %425 : vector<8x8xf32>
    %427 = vector.extract_strided_slice %9 {offsets = [0, 26], sizes = [8, 1], strides = [1, 1]} : vector<8x32xf32> to vector<8x1xf32>
    %428 = vector.extract_strided_slice %10 {offsets = [26, 0], sizes = [1, 8], strides = [1, 1]} : vector<32x8xf32> to vector<1x8xf32>
    %429 = vector.broadcast %427 : vector<8x1xf32> to vector<8x8xf32>
    %430 = vector.broadcast %428 : vector<1x8xf32> to vector<8x8xf32>
    %431 = arith.addf %429, %430 : vector<8x8xf32>
    %cst_127 = arith.constant 0.000000e+00 : f32
    %432 = vector.broadcast %cst_127 : f32 to vector<8x8xf32>
    %433 = arith.cmpf ogt, %431, %432 : vector<8x8xf32>
    %cst_128 = arith.constant 2.000000e-01 : f32
    %434 = vector.broadcast %cst_128 : f32 to vector<8x8xf32>
    %435 = arith.mulf %434, %431 : vector<8x8xf32>
    %436 = arith.select %433, %431, %435 : vector<8x8xi1>, vector<8x8xf32>
    %c3_129 = arith.constant 3 : index
    %c2_130 = arith.constant 2 : index
    %437 = memref.load %arg6[%c3_129, %c2_130] : memref<4x8xf32, #tpu.memory_space<smem>>
    %438 = vector.broadcast %437 : f32 to vector<8x8xf32>
    %439 = arith.mulf %438, %436 : vector<8x8xf32>
    %440 = arith.addf %426, %439 : vector<8x8xf32>
    %441 = vector.extract_strided_slice %9 {offsets = [0, 27], sizes = [8, 1], strides = [1, 1]} : vector<8x32xf32> to vector<8x1xf32>
    %442 = vector.extract_strided_slice %10 {offsets = [27, 0], sizes = [1, 8], strides = [1, 1]} : vector<32x8xf32> to vector<1x8xf32>
    %443 = vector.broadcast %441 : vector<8x1xf32> to vector<8x8xf32>
    %444 = vector.broadcast %442 : vector<1x8xf32> to vector<8x8xf32>
    %445 = arith.addf %443, %444 : vector<8x8xf32>
    %cst_131 = arith.constant 0.000000e+00 : f32
    %446 = vector.broadcast %cst_131 : f32 to vector<8x8xf32>
    %447 = arith.cmpf ogt, %445, %446 : vector<8x8xf32>
    %cst_132 = arith.constant 2.000000e-01 : f32
    %448 = vector.broadcast %cst_132 : f32 to vector<8x8xf32>
    %449 = arith.mulf %448, %445 : vector<8x8xf32>
    %450 = arith.select %447, %445, %449 : vector<8x8xi1>, vector<8x8xf32>
    %c3_133 = arith.constant 3 : index
    %c3_134 = arith.constant 3 : index
    %451 = memref.load %arg6[%c3_133, %c3_134] : memref<4x8xf32, #tpu.memory_space<smem>>
    %452 = vector.broadcast %451 : f32 to vector<8x8xf32>
    %453 = arith.mulf %452, %450 : vector<8x8xf32>
    %454 = arith.addf %440, %453 : vector<8x8xf32>
    %455 = vector.extract_strided_slice %9 {offsets = [0, 28], sizes = [8, 1], strides = [1, 1]} : vector<8x32xf32> to vector<8x1xf32>
    %456 = vector.extract_strided_slice %10 {offsets = [28, 0], sizes = [1, 8], strides = [1, 1]} : vector<32x8xf32> to vector<1x8xf32>
    %457 = vector.broadcast %455 : vector<8x1xf32> to vector<8x8xf32>
    %458 = vector.broadcast %456 : vector<1x8xf32> to vector<8x8xf32>
    %459 = arith.addf %457, %458 : vector<8x8xf32>
    %cst_135 = arith.constant 0.000000e+00 : f32
    %460 = vector.broadcast %cst_135 : f32 to vector<8x8xf32>
    %461 = arith.cmpf ogt, %459, %460 : vector<8x8xf32>
    %cst_136 = arith.constant 2.000000e-01 : f32
    %462 = vector.broadcast %cst_136 : f32 to vector<8x8xf32>
    %463 = arith.mulf %462, %459 : vector<8x8xf32>
    %464 = arith.select %461, %459, %463 : vector<8x8xi1>, vector<8x8xf32>
    %c3_137 = arith.constant 3 : index
    %c4_138 = arith.constant 4 : index
    %465 = memref.load %arg6[%c3_137, %c4_138] : memref<4x8xf32, #tpu.memory_space<smem>>
    %466 = vector.broadcast %465 : f32 to vector<8x8xf32>
    %467 = arith.mulf %466, %464 : vector<8x8xf32>
    %468 = arith.addf %454, %467 : vector<8x8xf32>
    %469 = vector.extract_strided_slice %9 {offsets = [0, 29], sizes = [8, 1], strides = [1, 1]} : vector<8x32xf32> to vector<8x1xf32>
    %470 = vector.extract_strided_slice %10 {offsets = [29, 0], sizes = [1, 8], strides = [1, 1]} : vector<32x8xf32> to vector<1x8xf32>
    %471 = vector.broadcast %469 : vector<8x1xf32> to vector<8x8xf32>
    %472 = vector.broadcast %470 : vector<1x8xf32> to vector<8x8xf32>
    %473 = arith.addf %471, %472 : vector<8x8xf32>
    %cst_139 = arith.constant 0.000000e+00 : f32
    %474 = vector.broadcast %cst_139 : f32 to vector<8x8xf32>
    %475 = arith.cmpf ogt, %473, %474 : vector<8x8xf32>
    %cst_140 = arith.constant 2.000000e-01 : f32
    %476 = vector.broadcast %cst_140 : f32 to vector<8x8xf32>
    %477 = arith.mulf %476, %473 : vector<8x8xf32>
    %478 = arith.select %475, %473, %477 : vector<8x8xi1>, vector<8x8xf32>
    %c3_141 = arith.constant 3 : index
    %c5_142 = arith.constant 5 : index
    %479 = memref.load %arg6[%c3_141, %c5_142] : memref<4x8xf32, #tpu.memory_space<smem>>
    %480 = vector.broadcast %479 : f32 to vector<8x8xf32>
    %481 = arith.mulf %480, %478 : vector<8x8xf32>
    %482 = arith.addf %468, %481 : vector<8x8xf32>
    %483 = vector.extract_strided_slice %9 {offsets = [0, 30], sizes = [8, 1], strides = [1, 1]} : vector<8x32xf32> to vector<8x1xf32>
    %484 = vector.extract_strided_slice %10 {offsets = [30, 0], sizes = [1, 8], strides = [1, 1]} : vector<32x8xf32> to vector<1x8xf32>
    %485 = vector.broadcast %483 : vector<8x1xf32> to vector<8x8xf32>
    %486 = vector.broadcast %484 : vector<1x8xf32> to vector<8x8xf32>
    %487 = arith.addf %485, %486 : vector<8x8xf32>
    %cst_143 = arith.constant 0.000000e+00 : f32
    %488 = vector.broadcast %cst_143 : f32 to vector<8x8xf32>
    %489 = arith.cmpf ogt, %487, %488 : vector<8x8xf32>
    %cst_144 = arith.constant 2.000000e-01 : f32
    %490 = vector.broadcast %cst_144 : f32 to vector<8x8xf32>
    %491 = arith.mulf %490, %487 : vector<8x8xf32>
    %492 = arith.select %489, %487, %491 : vector<8x8xi1>, vector<8x8xf32>
    %c3_145 = arith.constant 3 : index
    %c6_146 = arith.constant 6 : index
    %493 = memref.load %arg6[%c3_145, %c6_146] : memref<4x8xf32, #tpu.memory_space<smem>>
    %494 = vector.broadcast %493 : f32 to vector<8x8xf32>
    %495 = arith.mulf %494, %492 : vector<8x8xf32>
    %496 = arith.addf %482, %495 : vector<8x8xf32>
    %497 = vector.extract_strided_slice %9 {offsets = [0, 31], sizes = [8, 1], strides = [1, 1]} : vector<8x32xf32> to vector<8x1xf32>
    %498 = vector.extract_strided_slice %10 {offsets = [31, 0], sizes = [1, 8], strides = [1, 1]} : vector<32x8xf32> to vector<1x8xf32>
    %499 = vector.broadcast %497 : vector<8x1xf32> to vector<8x8xf32>
    %500 = vector.broadcast %498 : vector<1x8xf32> to vector<8x8xf32>
    %501 = arith.addf %499, %500 : vector<8x8xf32>
    %cst_147 = arith.constant 0.000000e+00 : f32
    %502 = vector.broadcast %cst_147 : f32 to vector<8x8xf32>
    %503 = arith.cmpf ogt, %501, %502 : vector<8x8xf32>
    %cst_148 = arith.constant 2.000000e-01 : f32
    %504 = vector.broadcast %cst_148 : f32 to vector<8x8xf32>
    %505 = arith.mulf %504, %501 : vector<8x8xf32>
    %506 = arith.select %503, %501, %505 : vector<8x8xi1>, vector<8x8xf32>
    %c3_149 = arith.constant 3 : index
    %c7_150 = arith.constant 7 : index
    %507 = memref.load %arg6[%c3_149, %c7_150] : memref<4x8xf32, #tpu.memory_space<smem>>
    %508 = vector.broadcast %507 : f32 to vector<8x8xf32>
    %509 = arith.mulf %508, %506 : vector<8x8xf32>
    %510 = arith.addf %496, %509 : vector<8x8xf32>
    %cst_151 = arith.constant -1.000000e+30 : f32
    %511 = vector.broadcast %cst_151 : f32 to vector<8x8xf32>
    %512 = arith.select %13, %510, %511 : vector<8x8xi1>, vector<8x8xf32>
    %cst_152 = arith.constant dense<0xFF800000> : vector<8xf32>
    %513 = vector.multi_reduction <maximumf>, %512, %cst_152 [1] : vector<8x8xf32> to vector<8xf32>
    %514 = vector.shape_cast %513 : vector<8xf32> to vector<8x1xf32>
    %515 = vector.broadcast %514 : vector<8x1xf32> to vector<8x8xf32>
    %516 = arith.subf %512, %515 : vector<8x8xf32>
    %517 = math.exp %516 : vector<8x8xf32>
    %cst_153 = arith.constant dense<0.000000e+00> : vector<8xf32>
    %518 = vector.multi_reduction <add>, %517, %cst_153 [1] : vector<8x8xf32> to vector<8xf32>
    %519 = vector.shape_cast %518 : vector<8xf32> to vector<8x1xf32>
    %520 = vector.broadcast %519 : vector<8x1xf32> to vector<8x8xf32>
    %521 = arith.divf %517, %520 : vector<8x8xf32>
    %522 = vector.extract_strided_slice %11 {offsets = [0, 24], sizes = [8, 8], strides = [1, 1]} : vector<8x32xbf16> to vector<8x8xbf16>
    %523 = arith.truncf %521 : vector<8x8xf32> to vector<8x8xbf16>
    %cst_154 = arith.constant dense<0.000000e+00> : vector<8x8xf32>
    %524 = tpu.matmul %523, %522, %cst_154 {dimension_numbers = #tpu.dot_dimension_numbers<[1], [0], [0], [1], [0, 0, 1, 1], [], []>} : vector<8x8xbf16>, vector<8x8xbf16>, vector<8x8xf32> -> vector<8x8xf32>
    %c0_155 = arith.constant 0 : index
    %c24 = arith.constant 24 : index
    %525 = vector.load %arg13[%c0_155, %c24] : memref<8x32xf32, #tpu.memory_space<vmem>>, vector<8x8xf32>
    tpu.vector_store %arg13[%c0_155, %c24], %524 {strides = array<i32>} : memref<8x32xf32, #tpu.memory_space<vmem>>, vector<8x8xf32>,
    %c0_156 = arith.constant 0 : index
    %c0_157 = arith.constant 0 : index
    %526 = vector.load %arg13[%c0_156, %c0_157] : memref<8x32xf32, #tpu.memory_space<vmem>>, vector<8x32xf32>
    %c0_158 = arith.constant 0 : index
    %c0_159 = arith.constant 0 : index
    %527 = vector.load %arg7[%c0_158, %c0_159] : memref<1x32xf32, #tpu.memory_space<vmem>>, vector<1x32xf32>
    %528 = vector.broadcast %527 : vector<1x32xf32> to vector<8x32xf32>
    %529 = arith.addf %526, %528 : vector<8x32xf32>
    %530 = arith.negf %529 : vector<8x32xf32>
    %531 = math.exp %530 : vector<8x32xf32>
    %cst_160 = arith.constant 1.000000e+00 : f32
    %532 = vector.broadcast %cst_160 : f32 to vector<8x32xf32>
    %533 = arith.addf %532, %531 : vector<8x32xf32>
    %534 = arith.divf %532, %533 : vector<8x32xf32>
    %535 = tpu.concatenate %534, %1 in 1 : vector<8x32xf32>, vector<8x32xf32> -> vector<8x64xf32>
    %536 = arith.truncf %535 : vector<8x64xf32> to vector<8x64xbf16>
    %c0_161 = arith.constant 0 : index
    %c0_162 = arith.constant 0 : index
    %537 = vector.load %arg8[%c0_161, %c0_162] : memref<64x64xbf16, #tpu.memory_space<vmem>>, vector<64x64xbf16>
    %cst_163 = arith.constant dense<0.000000e+00> : vector<8x64xf32>
    %538 = tpu.matmul %536, %537, %cst_163 {dimension_numbers = #tpu.dot_dimension_numbers<[1], [0], [0], [1], [0, 0, 1, 1], [], []>} : vector<8x64xbf16>, vector<64x64xbf16>, vector<8x64xf32> -> vector<8x64xf32>
    %c0_164 = arith.constant 0 : index
    %c0_165 = arith.constant 0 : index
    %539 = vector.load %arg9[%c0_164, %c0_165] : memref<1x64xf32, #tpu.memory_space<vmem>>, vector<1x64xf32>
    %540 = vector.broadcast %539 : vector<1x64xf32> to vector<8x64xf32>
    %541 = arith.addf %538, %540 : vector<8x64xf32>
    %542 = arith.negf %541 : vector<8x64xf32>
    %543 = math.exp %542 : vector<8x64xf32>
    %cst_166 = arith.constant 1.000000e+00 : f32
    %544 = vector.broadcast %cst_166 : f32 to vector<8x64xf32>
    %545 = arith.addf %544, %543 : vector<8x64xf32>
    %546 = arith.divf %544, %545 : vector<8x64xf32>
    %547 = vector.extract_strided_slice %546 {offsets = [0, 0], sizes = [8, 32], strides = [1, 1]} : vector<8x64xf32> to vector<8x32xf32>
    %548 = vector.extract_strided_slice %546 {offsets = [0, 32], sizes = [8, 32], strides = [1, 1]} : vector<8x64xf32> to vector<8x32xf32>
    %549 = arith.mulf %547, %1 : vector<8x32xf32>
    %550 = tpu.concatenate %534, %549 in 1 : vector<8x32xf32>, vector<8x32xf32> -> vector<8x64xf32>
    %551 = arith.truncf %550 : vector<8x64xf32> to vector<8x64xbf16>
    %c0_167 = arith.constant 0 : index
    %c0_168 = arith.constant 0 : index
    %552 = vector.load %arg10[%c0_167, %c0_168] : memref<64x32xbf16, #tpu.memory_space<vmem>>, vector<64x32xbf16>
    %cst_169 = arith.constant dense<0.000000e+00> : vector<8x32xf32>
    %553 = tpu.matmul %551, %552, %cst_169 {dimension_numbers = #tpu.dot_dimension_numbers<[1], [0], [0], [1], [0, 0, 1, 1], [], []>} : vector<8x64xbf16>, vector<64x32xbf16>, vector<8x32xf32> -> vector<8x32xf32>
    %c0_170 = arith.constant 0 : index
    %c0_171 = arith.constant 0 : index
    %554 = vector.load %arg11[%c0_170, %c0_171] : memref<1x32xf32, #tpu.memory_space<vmem>>, vector<1x32xf32>
    %555 = vector.broadcast %554 : vector<1x32xf32> to vector<8x32xf32>
    %556 = arith.addf %553, %555 : vector<8x32xf32>
    %557 = math.tanh %556 : vector<8x32xf32>
    %558 = arith.mulf %548, %1 : vector<8x32xf32>
    %cst_172 = arith.constant 1.000000e+00 : f32
    %559 = vector.broadcast %cst_172 : f32 to vector<8x32xf32>
    %560 = arith.subf %559, %548 : vector<8x32xf32>
    %561 = arith.mulf %560, %557 : vector<8x32xf32>
    %562 = arith.addf %558, %561 : vector<8x32xf32>
    %c0_173 = arith.constant 0 : index
    %c0_174 = arith.constant 0 : index
    %563 = vector.load %arg12[%c0_173, %c0_174] : memref<8x32xf32, #tpu.memory_space<vmem>>, vector<8x32xf32>
    tpu.vector_store %arg12[%c0_173, %c0_174], %562 {strides = array<i32>} : memref<8x32xf32, #tpu.memory_space<vmem>>, vector<8x32xf32>,
    return
  }
  func.func @transform_0(%arg0: i32) -> (i32, i32) {
    %c0_i32 = arith.constant 0 : i32
    %c0_i32_0 = arith.constant 0 : i32
    return %arg0, %c0_i32 : i32, i32
  }
  func.func @transform_1(%arg0: i32) -> (i32, i32) {
    %c0_i32 = arith.constant 0 : i32
    %c0_i32_0 = arith.constant 0 : i32
    %c0_i32_1 = arith.constant 0 : i32
    return %c0_i32, %c0_i32_0 : i32, i32
  }
  func.func @transform_2(%arg0: i32) -> (i32, i32) {
    %c0_i32 = arith.constant 0 : i32
    %c0_i32_0 = arith.constant 0 : i32
    return %arg0, %c0_i32 : i32, i32
  }
  func.func @transform_3(%arg0: i32) -> (i32, i32) {
    %c0_i32 = arith.constant 0 : i32
    %c0_i32_0 = arith.constant 0 : i32
    %c0_i32_1 = arith.constant 0 : i32
    return %c0_i32, %c0_i32_0 : i32, i32
  }
  func.func @transform_4(%arg0: i32) -> (i32, i32) {
    %c0_i32 = arith.constant 0 : i32
    %c0_i32_0 = arith.constant 0 : i32
    %c0_i32_1 = arith.constant 0 : i32
    return %c0_i32, %c0_i32_0 : i32, i32
  }
  func.func @transform_5(%arg0: i32) -> (i32, i32) {
    %c0_i32 = arith.constant 0 : i32
    %c0_i32_0 = arith.constant 0 : i32
    %c0_i32_1 = arith.constant 0 : i32
    return %c0_i32, %c0_i32_0 : i32, i32
  }
  func.func @transform_6(%arg0: i32) -> (i32, i32) {
    %c0_i32 = arith.constant 0 : i32
    %c0_i32_0 = arith.constant 0 : i32
    %c0_i32_1 = arith.constant 0 : i32
    return %c0_i32, %c0_i32_0 : i32, i32
  }
  func.func @transform_7(%arg0: i32) -> (i32, i32) {
    %c0_i32 = arith.constant 0 : i32
    %c0_i32_0 = arith.constant 0 : i32
    %c0_i32_1 = arith.constant 0 : i32
    return %c0_i32, %c0_i32_0 : i32, i32
  }
  func.func @transform_8(%arg0: i32) -> (i32, i32) {
    %c0_i32 = arith.constant 0 : i32
    %c0_i32_0 = arith.constant 0 : i32
    %c0_i32_1 = arith.constant 0 : i32
    return %c0_i32, %c0_i32_0 : i32, i32
  }
  func.func @transform_9(%arg0: i32) -> (i32, i32) {
    %c0_i32 = arith.constant 0 : i32
    %c0_i32_0 = arith.constant 0 : i32
    %c0_i32_1 = arith.constant 0 : i32
    return %c0_i32, %c0_i32_0 : i32, i32
  }
  func.func @transform_10(%arg0: i32) -> (i32, i32) {
    %c0_i32 = arith.constant 0 : i32
    %c0_i32_0 = arith.constant 0 : i32
    %c0_i32_1 = arith.constant 0 : i32
    return %c0_i32, %c0_i32_0 : i32, i32
  }
  func.func @transform_11(%arg0: i32) -> (i32, i32) {
    %c0_i32 = arith.constant 0 : i32
    %c0_i32_0 = arith.constant 0 : i32
    return %arg0, %c0_i32 : i32, i32
  }
}

</mosaic_0001>

<bundles_post_ra>
// kernel: tpu_custom_call.1
= control target key start
LH: loop header
LB: loop body
LE: loop exit
PB: predicated region body
PF: predicated region fallthrough
CT: control target
= control target key end

     0   :  { %s2232_s0 = inlined_call_operand.vmem [shape: bf16[8,8], index: 0, kind: input, shape index: {}]   ;;  %s2233_s1 = inlined_call_operand.vmem [shape: bf16[8,8], index: 1, kind: input, shape index: {}]   ;;  %s2234_s2 = inlined_call_operand.vmem [shape: f32[8,32], index: 2, kind: input, shape index: {}]   ;;  %s2235_s3 = inlined_call_operand.hbm [shape: bf16[8,64], index: 3, kind: input, shape index: {}]   ;;  %s2236_s4 = inlined_call_operand.hbm [shape: f32[1,64], index: 4, kind: input, shape index: {}]   ;;  %s2237_s5 = inlined_call_operand.hbm [shape: f32[4,8], index: 5, kind: input, shape index: {}]   ;;  %s2238_s6 = inlined_call_operand.hbm [shape: f32[1,32], index: 6, kind: input, shape index: {}]   ;;  %s2239_s7 = inlined_call_operand.vmem [shape: bf16[64,64], index: 7, kind: input, shape index: {}]   ;;  %s2240_s8 = inlined_call_operand.hbm [shape: f32[1,64], index: 8, kind: input, shape index: {}]   ;;  %s2241_s9 = inlined_call_operand.vmem [shape: bf16[64,32], index: 9, kind: input, shape index: {}]   ;;  %s2242_s10 = inlined_call_operand.vmem [shape: f32[1,32], index: 10, kind: input, shape index: {}]   ;;  %s2243_s11 = inlined_call_operand.hbm [shape: f32[8,32], index: 11, kind: output, shape index: {}]  }
   0x1   :  { %2247 = sst [smem:[#allocation20_spill]] %s2241_s9 }
   0x2   :  { %2248 = sst [smem:[#allocation21_spill]] %s2242_s10 }
   0x3   :  { %2249 = sst [smem:[#allocation22_spill]] %s2243_s11 }
   0x4   :  { %16 = vsyncpa [#allocation4], 0 }
   0x5   :  { %17 = vsyncpa [#allocation8], 0 }
   0x6   :  { %18 = vsyncpa [#allocation6], 0 }
   0x7   :  { %19 = vsyncpa [#allocation12], 0 }
   0x8   :  { %20 = vsyncpa [#allocation5], 0  ;;  %s1565_s17 = smov [#allocation7]   ;;  %s1566_s19 = smov [#allocation3]  }
   0x9   :  { %s43_s18 = sshll.u32 %s1565_s17, 4  ;;  %s33_s20 = sshll.u32 %s1566_s19, 4  ;;  %s44_s18 = int_to_ptr.vmem [resolvable:$true] %s43_s18  ;;  %s34_s20 = int_to_ptr.vmem [resolvable:$true] %s33_s20 }
   0xa   :  { %s1453_s21 = scalar_lea.vmem %s44_s18, 16  ;;  %s1457_s22 = scalar_lea.vmem %s44_s18, 32 }
   0xb   :  { %p1454_p0 = scmp.ne.s32.totalorder %s44_s18, %s1453_s21  ;;  %p1458_p1 = scmp.lt.s32.totalorder %s44_s18, %s44_s18 }
   0xc   :  { %p1459_p2 = scmp.lt.s32.totalorder %s1457_s22, %s1453_s21 }
   0xe   :  { %p1460_p3 = por %p1459_p2, %p1458_p1 }
  0x10   :  { %p1461_p4 = pnand %p1460_p3, %p1454_p0 }
  0x12   :  { %1464 = shalt.err (!%p1461_p4)
}
  0x13   :  { %46 = dma.hbm_to_vmem [thread:$0]  %s2236_s4, 16, %s44_s18, [#allocation8]  }
  0x14   :  { %s1473_s25 = scalar_lea.vmem %s34_s20, 64  ;;  %p1478_p6 = scmp.lt.s32.totalorder %s34_s20, %s34_s20 }
  0x15   :  { %p1474_p5 = scmp.ne.s32.totalorder %s34_s20, %s1473_s25  ;;  %p1479_p7 = scmp.lt.s32.totalorder %s1473_s25, %s1473_s25 }
  0x17   :  { %p1480_p8 = por %p1479_p7, %p1478_p6 }
  0x19   :  { %p1481_p9 = pnand %p1480_p8, %p1474_p5 }
  0x1b   :  { %1484 = shalt.err (!%p1481_p9)
}
  0x1c   :  { %36 = dma.hbm_to_vmem [thread:$0]  %s2235_s3, 64, %s34_s20, [#allocation4]  }
  0x1d   :  { %s1567_s28 = smov [#allocation9]   ;;  %s1568_s12 = smov [#allocation10]  }
  0x1e   :  { %54 = dma.hbm_to_smem %s2237_s5, 64, %s1567_s28, [#allocation6]  }
  0x1f   :  { %s61_s13 = sshll.u32 %s1568_s12, 4  ;;  %s1569_s4 = smov [#allocation11]   ;;  %s62_s13 = int_to_ptr.vmem [resolvable:$true] %s61_s13 }
  0x20   :  { %s73_s14 = sshll.u32 %s1569_s4, 4  ;;  %s1501_s15 = scalar_lea.vmem %s62_s13, 16  ;;  %s74_s14 = int_to_ptr.vmem [resolvable:$true] %s73_s14 }
  0x21   :  { %p1502_p10 = scmp.ne.s32.totalorder %s62_s13, %s1501_s15  ;;  %s1505_s16 = scalar_lea.vmem %s62_s13, 32 }
  0x22   :  { %p1506_p11 = scmp.lt.s32.totalorder %s62_s13, %s62_s13  ;;  %p1507_p12 = scmp.lt.s32.totalorder %s1505_s16, %s1501_s15 }
  0x24   :  { %p1508_p13 = por %p1507_p12, %p1506_p11 }
  0x26   :  { %p1509_p0 = pnand %p1508_p13, %p1502_p10 }
  0x28   :  { %1512 = shalt.err (!%p1509_p0)
}
  0x29   :  { %64 = dma.hbm_to_vmem [thread:$0]  %s2238_s6, 16, %s62_s13, [#allocation8]  }
  0x2a   :  { %s1521_s18 = scalar_lea.vmem %s74_s14, 16  ;;  %s1525_s5 = scalar_lea.vmem %s74_s14, 32 }
  0x2b   :  { %p1522_p1 = scmp.ne.s32.totalorder %s74_s14, %s1521_s18  ;;  %p1526_p2 = scmp.lt.s32.totalorder %s74_s14, %s74_s14 }
  0x2c   :  { %p1527_p3 = scmp.lt.s32.totalorder %s1525_s5, %s1521_s18 }
  0x2e   :  { %p1528_p4 = por %p1527_p3, %p1526_p2 }
  0x30   :  { %p1529_p5 = pnand %p1528_p4, %p1522_p1 }
  0x32   :  { %1532 = shalt.err (!%p1529_p5)
}
  0x33   :  { %76 = dma.hbm_to_vmem [thread:$0]  %s2240_s8, 16, %s74_s14, [#allocation12]  }
  0x34   :  { %1553 = dma.done.wait [#allocation4], 64  }
  0x35   :  { %1554 = vsyncadd [#allocation4], 4294967232 }
  0x36   :  { %1555 = dma.done.wait [#allocation8], 16  }
  0x37   :  { %1556 = vsyncadd [#allocation8], 4294967280 }
  0x38   :  { %1557 = dma.done.wait [#allocation6], 64  }
  0x39   :  { %1558 = vsyncadd [#allocation6], 4294967232 }
  0x3a   :  { %1559 = dma.done.wait [#allocation8], 16  }
  0x3b   :  { %1560 = vsyncadd [#allocation8], 4294967280 }
  0x3c   :  { %1561 = dma.done.wait [#allocation12], 16  }
  0x3d   :  { %1562 = vsyncadd [#allocation12], 4294967280 }
  0x3e   :  { %96 = sfence }
  0x3f   :  { %v103_v0 = vld [vmem:[#allocation3] sm:$0xf]  ;;  %vm115_vm0 = vcmask 1043456   ;;  %v2245_v1 = vmov 0.0   ;;  %vm1571_vm1 = vmmov 0   ;;  %vm111_vm2 = vcmask 64512  }
  0x40   :  { %1275 = vmatprep.subr.bf16.mxu0 %v2245_v1  ;;  %v117_v2 = vsel %vm115_vm0, %v103_v0, 0  ;;  %1277 = vmatprep.mubr.msk.bf16.mxu0 %vm1571_vm1, %v2245_v1  ;;  %v102_v3 = vld [vmem:[%s2233_s1] sm:$0xf]  ;;  %v1572_v4 = vmov 40   ;;  %v1573_v5 = vmov 32   ;;  %v1574_v14 = vmov 41  }
  0x41   :  { %1276 = vmatpush3.bf16.msra.mxu0 %v117_v2  ;;  %1281 = vmatprep.subr.bf16.mxu1 %v2245_v1  ;;  %v1203_v6 = vld [vmem:[#allocation7] ss:$0 sm:$0xff]  ;;  %v1575_v15 = vmov 33   ;;  %v1576_v16 = vmov 34   ;;  %v1577_v17 = vmov 42   ;;  %v1578_v18 = vmov 35  }
  0x42   :  { %1287 = vmatprep.subr.bf16.mxu0 %v2245_v1  ;;  %1283 = vmatprep.mubr.msk.bf16.mxu1 %vm1571_vm1, %v2245_v1  ;;  %v1579_v19 = vmov 36   ;;  %v1580_v20 = vmov 43   ;;  %v1581_v21 = vmov 48   ;;  %v1582_v22 = vmov 44   ;;  %s1777_s1 = sld [smem:[#allocation9]] }
  0x43   :  { %1380 = vset.pattern.permute.xlu1 %v1572_v4  ;;  %1378 = vset.pattern.permute.xlu0 %v1573_v5  ;;  %v1583_v23 = vmov 56   ;;  %v1584_v24 = vmov 37   ;;  %v1585_v25 = vmov 50   ;;  %v1586_v26 = vmov 49   ;;  %s1781_s21 = sld [smem:[#allocation9 + $0x1]] }
  0x44   :  { %1278 = vmatmul.mubr.msk.bf16.vlgmr.msra.gmra.mxu0 %vm111_vm2, %v102_v3  ;;  %v1587_v27 = vmov 39   ;;  %v1588_v28 = vmov 45   ;;  %v1589_v29 = vmov 59   ;;  %v1590_v30 = vmov 57   ;;  %s1783_s22 = sld [smem:[#allocation9 + $0x2]] }
  0x45   :  { %1289 = vmatprep.mubr.msk.bf16.mxu0 %vm1571_vm1, %v2245_v1  ;;  %v1591_v31 = vmov 53   ;;  %v1592_v32 = vmov 38   ;;  %v1593_v33 = vmov 62   ;;  %v1594_v34 = vmov 46   ;;  %s1785_s23 = sld [smem:[#allocation9 + $0x3]] }
  0x46   :  { %v1595_v35 = vmov 58   ;;  %v1596_v36 = vmov 51   ;;  %v1597_v37 = vmov 47   ;;  %v1598_v38 = vmov 52   ;;  %s1789_s24 = sld [smem:[#allocation9 + $0x106]] }
  0x47   :  { %v1599_v39 = vmov 60   ;;  %v1600_v40 = vmov 61   ;;  %v1601_v41 = vmov 54   ;;  %v1602_v42 = vmov 55   ;;  %s1791_s25 = sld [smem:[#allocation9 + $0x4]] }
  0x48   :  { %v1603_v43 = vmov 63   ;;  %s1795_s26 = sld [smem:[#allocation9 + $0x5]]  ;;  %v198_v4 = vlaneseq }
  0x49   :  { %s1797_s27 = sld [smem:[#allocation9 + $0x6]] }
  0x4a   :  { %s1799_s28 = sld [smem:[#allocation9 + $0x7]]  ;;  %v199_v5 = vshrl.u32 %v198_v4, 7 }
  0x4b   :  { %s1801_s29 = sld [smem:[#allocation9 + $0x80]] }
  0x4c   :  { %s1805_s30 = sld [smem:[#allocation9 + $0x81]] }
  0x4d   :  { %s1809_s12 = sld [smem:[#allocation9 + $0x82]] }
  0x4e   :  { %s1811_s13 = sld [smem:[#allocation9 + $0x83]] }
  0x4f   :  { %s1813_s4 = sld [smem:[#allocation9 + $0x84]] }
  0x50   :  { %s1815_s14 = sld [smem:[#allocation9 + $0x85]] }
  0x51   :  { %s1817_s15 = sld [smem:[#allocation9 + $0x86]] }
  0x52   :  { %s1823_s16 = sld [smem:[#allocation9 + $0x87]] }
  0x53   :  { %s1825_s17 = sld [smem:[#allocation9 + $0x100]] }
  0x54   :  { %s1827_s3 = sld [smem:[#allocation9 + $0x101]] }
  0x55   :  { %s1829_s18 = sld [smem:[#allocation9 + $0x102]] }
  0x56   :  { %s1834_s20 = sld [smem:[#allocation9 + $0x103]] }
  0x57   :  { %s1838_s6 = sld [smem:[#allocation9 + $0x104]] }
  0x58   :  { %s1842_s8 = sld [smem:[#allocation9 + $0x105]] }
  0x59   :  { %s1844_s11 = sld [smem:[#allocation9 + $0x107]] }
  0x5a   :  { %s1862_s5 = sld [smem:[#allocation9 + $0x181]] }
  0x5b   :  { %s1873_s19 = sld [smem:[#allocation9 + $0x182]] }
  0x5c   :  { %s1879_s10 = sld [smem:[#allocation9 + $0x183]] }
  0x5d   :  { %s1887_s9 = sld [smem:[#allocation9 + $0x184]] }
 0x104   :  { %v153_v7 = vpop.f32.mrf.mxu0 }
 0x105   :  { %v1703_v8 = vadd.f32 %v1203_v6, %v153_v7  ;;  %v100_v6 = vld [vmem:[%s2232_s0] sm:$0xf]  ;;  %s1852_s0 = sld [smem:[#allocation9 + $0x180]] }
 0x106   :  { %v1279_v9 = vpop.f32.mrf.mxu0  ;;  %vm192_vm3 = vcmp.gt.bf16.partialorder %v100_v6, 0 }
 0x107   :  { %386 = vperm.xlu1 %1380, %v1703_v8   ;;  %195 = vperm.xlu0 %1378, %v1703_v8   ;;  %v1709_v10 = vpack.c.bf16 %v1703_v8, %v1703_v8  ;;  %v1846_v9 = vsub.s32 0, %v199_v5 }
 0x108   :  { %v156_v11 = vpop.f32.mrf.mxu0 }
 0x109   :  { %v342_v12 = vsel %vm115_vm0, %v1709_v10, 0  ;;  %v1848_v11 = vsub.s32 1, %v199_v5 }
 0x10a   :  { %v1280_v13 = vpop.f32.mrf.mxu0  ;;  %1282 = vmatpush3.bf16.msra.mxu1 %v342_v12  ;;  %v1850_v12 = vsub.s32 2, %v199_v5 }
 0x10b   :  { %1381 = vset.pattern.permute.xlu1 %v1574_v14  ;;  %1379 = vset.pattern.permute.xlu0 %v1575_v15  ;;  %v1854_v13 = vsub.s32 3, %v199_v5  ;;  %v1856_v14 = vsub.s32 6, %v199_v5  ;;  %v1858_v15 = vsub.s32 7, %v199_v5 }
 0x10c   :  { %402 = vperm.xlu1 %1381, %v1703_v8   ;;  %211 = vperm.xlu0 %1379, %v1703_v8  }
 0x10d   :  { %1293 = vmatprep.subr.bf16.mxu1 %v2245_v1 }
 0x110   :  { %1382 = vset.pattern.permute.xlu1 %v1576_v16  ;;  %1383 = vset.pattern.permute.xlu0 %v1577_v17  ;;  %v1860_v16 = vsub.s32 4, %v199_v5 }
 0x111   :  { %227 = vperm.xlu1 %1382, %v1703_v8   ;;  %418 = vperm.xlu0 %1383, %v1703_v8  }
 0x115   :  { %1384 = vset.pattern.permute.xlu1 %v1578_v18  ;;  %1386 = vset.pattern.permute.xlu0 %v1579_v19  ;;  %v207_v18 = vstv %s1777_s1  ;;  %v223_v19 = vstv %s1781_s21  ;;  %s2095_s1 = sld [smem:[#allocation9 + $0x185]] }
 0x116   :  { %243 = vperm.xlu1 %1384, %v1703_v8   ;;  %259 = vperm.xlu0 %1386, %v1703_v8   ;;  %s2120_s21 = sld [smem:[#allocation9 + $0x186]] }
 0x11a   :  { %1385 = vset.pattern.permute.xlu1 %v1580_v20  ;;  %1389 = vset.pattern.permute.xlu0 %v1581_v21  ;;  %v1868_v20 = vsub.s32 5, %v199_v5  ;;  %v1604_v21 = vmov 0  }
 0x11b   :  { %434 = vperm.xlu1 %1385, %v1703_v8   ;;  %582 = vperm.xlu0 %1389, %v1703_v8  }
 0x11f   :  { %1387 = vset.pattern.permute.xlu1 %v1582_v22  ;;  %1392 = vset.pattern.permute.xlu0 %v1583_v23  ;;  %v1871_v22 = vsel %vm192_vm3, 65537, %v1604_v21 }
 0x120   :  { %450 = vperm.xlu1 %1387, %v1703_v8   ;;  %777 = vperm.xlu0 %1392, %v1703_v8  }
 0x124   :  { %1388 = vset.pattern.permute.xlu1 %v1584_v24  ;;  %1395 = vset.pattern.permute.xlu0 %v1585_v25  ;;  %v239_v24 = vstv %s1783_s22  ;;  %v255_v25 = vstv %s1785_s23  ;;  %s2130_s22 = sld [smem:[#allocation9 + $0x187]]  ;;  %s1608_s23 = smov 8  }
 0x125   :  { %275 = vperm.xlu1 %1388, %v1703_v8   ;;  %614 = vperm.xlu0 %1395, %v1703_v8  }
 0x129   :  { %1390 = vset.pattern.permute.xlu1 %v1586_v26  ;;  %1398 = vset.pattern.permute.xlu0 %v1587_v27 }
 0x12a   :  { %598 = vperm.xlu1 %1390, %v1703_v8   ;;  %307 = vperm.xlu0 %1398, %v1703_v8  }
 0x12e   :  { %1391 = vset.pattern.permute.xlu1 %v1588_v28  ;;  %1401 = vset.pattern.permute.xlu0 %v1589_v29 }
 0x12f   :  { %466 = vperm.xlu1 %1391, %v1703_v8   ;;  %825 = vperm.xlu0 %1401, %v1703_v8  }
 0x133   :  { %1393 = vset.pattern.permute.xlu1 %v1590_v30  ;;  %1404 = vset.pattern.permute.xlu0 %v1591_v31 }
 0x134   :  { %793 = vperm.xlu1 %1393, %v1703_v8   ;;  %662 = vperm.xlu0 %1404, %v1703_v8  }
 0x138   :  { %1394 = vset.pattern.permute.xlu1 %v1592_v32  ;;  %1407 = vset.pattern.permute.xlu0 %v1593_v33  ;;  %v323_v32 = vunpack.c.l.b16 %v1871_v22 }
 0x139   :  { %291 = vperm.xlu1 %1394, %v1703_v8   ;;  %873 = vperm.xlu0 %1407, %v1703_v8  }
 0x13a   :  { %vm1988_vm13 = vcmp.ne.s32.totalorder %v323_v32, 0 }
 0x13d   :  { %1396 = vset.pattern.permute.xlu1 %v1594_v34 }
 0x13e   :  { %482 = vperm.xlu1 %1396, %v1703_v8  }
 0x142   :  { %1397 = vset.pattern.permute.xlu1 %v1595_v35 }
 0x143   :  { %809 = vperm.xlu1 %1397, %v1703_v8  }
 0x147   :  { %1399 = vset.pattern.permute.xlu1 %v1596_v36 }
 0x148   :  { %630 = vperm.xlu1 %1399, %v1703_v8  }
 0x14c   :  { %1400 = vset.pattern.permute.xlu1 %v1597_v37 }
 0x14d   :  { %498 = vperm.xlu1 %1400, %v1703_v8  }
 0x151   :  { %1402 = vset.pattern.permute.xlu1 %v1598_v38 }
 0x152   :  { %646 = vperm.xlu1 %1402, %v1703_v8  }
 0x156   :  { %1403 = vset.pattern.permute.xlu1 %v1599_v39 }
 0x157   :  { %841 = vperm.xlu1 %1403, %v1703_v8   ;;  %159 = vxpose.xlu0.b32.start.end [1/1] (short) (narrow) %v1703_v8, 32 }
 0x15b   :  { %1405 = vset.pattern.permute.xlu1 %v1600_v40 }
 0x15c   :  { %857 = vperm.xlu1 %1405, %v1703_v8  }
 0x160   :  { %1406 = vset.pattern.permute.xlu1 %v1601_v41 }
 0x161   :  { %678 = vperm.xlu1 %1406, %v1703_v8  }
 0x165   :  { %1408 = vset.pattern.permute.xlu1 %v1602_v42 }
 0x166   :  { %694 = vperm.xlu1 %1408, %v1703_v8  }
 0x16a   :  { %1409 = vset.pattern.permute.xlu1 %v1603_v43 }
 0x16b   :  { %889 = vperm.xlu1 %1409, %v1703_v8  }
 0x180   :  { %1410 = vset.pattern.permute.xlu0 %v1603_v43 }
 0x182   :  { %v1745_v44 = vpop.permute.xlu1 %386  ;;  %v1753_v48 = vpop.permute.xlu0 %195 }
 0x187   :  { %v1747_v45 = vpop.permute.xlu1 %402  ;;  %v1757_v50 = vpop.permute.xlu0 %211 }
 0x18c   :  { %v1749_v46 = vpop.permute.xlu1 %227  ;;  %v1761_v52 = vpop.permute.xlu0 %418 }
 0x191   :  { %v1751_v47 = vpop.permute.xlu1 %243  ;;  %v1765_v54 = vpop.permute.xlu0 %259 }
 0x196   :  { %v1755_v49 = vpop.permute.xlu1 %434  ;;  %v1771_v57 = vpop.permute.xlu0 %582 }
 0x19b   :  { %v1759_v51 = vpop.permute.xlu1 %450  ;;  %v1775_v59 = vpop.permute.xlu0 %777 }
 0x1a0   :  { %v1763_v53 = vpop.permute.xlu1 %275  ;;  %v1787_v61 = vpop.permute.xlu0 %614 }
 0x1a5   :  { %v1767_v55 = vpop.permute.xlu1 %598  ;;  %v1803_v63 = vpop.permute.xlu0 %307 }
 0x1aa   :  { %v1769_v56 = vpop.permute.xlu1 %466  ;;  %v1819_v2 = vpop.permute.xlu0 %825 }
 0x1af   :  { %v1773_v58 = vpop.permute.xlu1 %793  ;;  %v1840_v8 = vpop.permute.xlu0 %662 }
 0x1b4   :  { %v1779_v60 = vpop.permute.xlu1 %291  ;;  %v1881_v27 = vpop.permute.xlu0 %873 }
 0x1b9   :  { %v1793_v62 = vpop.permute.xlu1 %482 }
 0x1be   :  { %v1807_v0 = vpop.permute.xlu1 %809 }
 0x1c3   :  { %v1821_v3 = vpop.permute.xlu1 %630 }
 0x1c8   :  { %v1836_v7 = vpop.permute.xlu1 %498 }
 0x1cd   :  { %v1864_v17 = vpop.permute.xlu1 %646 }
 0x1d2   :  { %v1897_v40 = vpop.permute.xlu1 %841 }
 0x1d3   :  { %v175_v5 = vpop.trf.xlu0 }
 0x1d4   :  { %v201_v34 = vrot.slane %v175_v5, %v1846_v9  ;;  %v217_v37 = vrot.slane %v175_v5, %v1848_v11  ;;  %v233_v39 = vrot.slane %v175_v5, %v1850_v12  ;;  %v249_v41 = vrot.slane %v175_v5, %v1854_v13 }
 0x1d5   :  { %v265_v42 = vrot.slane %v175_v5, %v1860_v16  ;;  %v281_v4 = vrot.slane %v175_v5, %v1868_v20  ;;  %v297_v6 = vrot.slane %v175_v5, %v1856_v14  ;;  %v313_v38 = vrot.slane %v175_v5, %v1858_v15 }
 0x1d6   :  { %v202_v1 = vadd.f32 %v201_v34, %v1753_v48  ;;  %v218_v31 = vadd.f32 %v217_v37, %v1757_v50  ;;  %v234_v43 = vadd.f32 %v233_v39, %v1749_v46  ;;  %v250_v33 = vadd.f32 %v249_v41, %v1751_v47 }
 0x1d7   :  { %v1919_v36 = vpop.permute.xlu1 %857  ;;  %v1921_v35 = vpop.trf.xlu0  ;;  %v266_v48 = vadd.f32 %v265_v42, %v1765_v54  ;;  %v282_v50 = vadd.f32 %v281_v4, %v1763_v53  ;;  %v1932_v46 = vadd.f32 %v297_v6, %v1779_v60  ;;  %v314_v41 = vadd.f32 %v313_v38, %v1803_v63 }
 0x1d8   :  { %v392_v21 = vrot.slane %v1921_v35, %v1846_v9  ;;  %vm203_vm4 = vcmp.gt.f32.partialorder %v202_v1, 0.0  ;;  %v204_v34 = vmul.f32 0.2, %v202_v1  ;;  %vm219_vm5 = vcmp.gt.f32.partialorder %v218_v31, 0.0 }
 0x1d9   :  { %v220_v37 = vmul.f32 0.2, %v218_v31  ;;  %v408_v47 = vrot.slane %v1921_v35, %v1848_v11  ;;  %vm235_vm6 = vcmp.gt.f32.partialorder %v234_v43, 0.0  ;;  %v236_v39 = vmul.f32 0.2, %v234_v43 }
 0x1da   :  { %v205_v54 = vsel %vm203_vm4, %v202_v1, %v204_v34  ;;  %vm251_vm7 = vcmp.gt.f32.partialorder %v250_v33, 0.0  ;;  %v252_v60 = vmul.f32 0.2, %v250_v33  ;;  %v393_v38 = vadd.f32 %v392_v21, %v1745_v44 }
 0x1db   :  { %v1937_v5 = vpop.trf.xlu0  ;;  %v221_v53 = vsel %vm219_vm5, %v218_v31, %v220_v37  ;;  %v208_v31 = vmul.f32 %v207_v18, %v205_v54  ;;  %v409_v37 = vadd.f32 %v408_v47, %v1747_v45  ;;  %v237_v30 = vsel %vm235_vm6, %v234_v43, %v236_v39 }
 0x1dc   :  { %v588_v6 = vrot.slane %v1937_v5, %v1846_v9  ;;  %v604_v23 = vrot.slane %v1937_v5, %v1848_v11  ;;  %v679_v63 = vpop.permute.xlu1 %678  ;;  %v684_v1 = vrot.slane %v1937_v5, %v1856_v14  ;;  %v224_v34 = vmul.f32 %v223_v19, %v221_v53 }
 0x1dd   :  { %v620_v29 = vrot.slane %v1937_v5, %v1850_v12  ;;  %v253_v4 = vsel %vm251_vm7, %v250_v33, %v252_v60  ;;  %v636_v42 = vrot.slane %v1937_v5, %v1854_v13  ;;  %v240_v26 = vmul.f32 %v239_v24, %v237_v30 }
 0x1de   :  { %v685_v44 = vadd.f32 %v684_v1, %v679_v63  ;;  %v225_v28 = vadd.f32 %v224_v34, %v208_v31  ;;  %v1965_v18 = vadd.f32 %v588_v6, %v1771_v57  ;;  %v1968_v45 = vadd.f32 %v604_v23, %v1767_v55 }
 0x1df   :  { %v1960_v21 = vpop.trf.xlu0  ;;  %v700_v19 = vrot.slane %v1937_v5, %v1858_v15  ;;  %v256_v33 = vmul.f32 %v255_v25, %v253_v4  ;;  %vm267_vm9 = vcmp.gt.f32.partialorder %v266_v48, 0.0  ;;  %v268_v30 = vmul.f32 0.2, %v266_v48 }
 0x1e0   :  { %vm686_vm8 = vcmp.gt.f32.partialorder %v685_v44, 0.0  ;;  %v687_v43 = vmul.f32 0.2, %v685_v44  ;;  %v783_v47 = vrot.slane %v1960_v21, %v1846_v9  ;;  %v241_v54 = vadd.f32 %v240_v26, %v225_v28 }
 0x1e1   :  { %v695_v39 = vpop.permute.xlu1 %694  ;;  %v799_v24 = vrot.slane %v1960_v21, %v1848_v11  ;;  %v815_v57 = vrot.slane %v1960_v21, %v1850_v12  ;;  %v831_v23 = vrot.slane %v1960_v21, %v1854_v13  ;;  %v895_v25 = vrot.slane %v1960_v21, %v1858_v15 }
 0x1e2   :  { %v701_v55 = vadd.f32 %v700_v19, %v695_v39  ;;  %vm283_vm10 = vcmp.gt.f32.partialorder %v282_v50, 0.0  ;;  %v688_v9 = vsel %vm686_vm8, %v685_v44, %v687_v43  ;;  %v257_v26 = vadd.f32 %v256_v33, %v241_v54 }
 0x1e3   :  { %v284_v28 = vmul.f32 0.2, %v282_v50  ;;  %v269_v11 = vsel %vm267_vm9, %v266_v48, %v268_v30  ;;  %vm299_vm11 = vcmp.gt.f32.partialorder %v1932_v46, 0.0  ;;  %v300_v60 = vmul.f32 0.2, %v1932_v46 }
 0x1e4   :  { %v703_v53 = vmul.f32 0.2, %v701_v55  ;;  %vm315_vm12 = vcmp.gt.f32.partialorder %v314_v41, 0.0  ;;  %vm702_vm14 = vcmp.gt.f32.partialorder %v701_v55, 0.0  ;;  %v2252_v6 = vstv %s1791_s25 }
 0x1e5   :  { %v272_v63 = vmul.f32 %v2252_v6, %v269_v11  ;;  %v285_v1 = vsel %vm283_vm10, %v282_v50, %v284_v28  ;;  %v316_v31 = vmul.f32 0.2, %v314_v41  ;;  %v1995_v48 = vadd.f32 %v783_v47, %v1775_v59 }
 0x1e6   :  { %v1998_v34 = vadd.f32 %v799_v24, %v1773_v58  ;;  %v301_v22 = vsel %vm299_vm11, %v1932_v46, %v300_v60  ;;  %vm394_vm15 = vcmp.gt.f32.partialorder %v393_v38, 0.0  ;;  %v2253_v44 = vstv %s1795_s26 }
 0x1e7   :  { %v273_v32 = vadd.f32 %v272_v63, %v257_v26  ;;  %v288_v19 = vmul.f32 %v2253_v44, %v285_v1  ;;  %v317_v33 = vsel %vm315_vm12, %v314_v41, %v316_v31  ;;  %v395_v43 = vmul.f32 0.2, %v393_v38 }
 0x1e8   :  { %v2254_v39 = vstv %s1789_s24  ;;  %v2007_v50 = vsel %vm702_vm14, %v701_v55, %v703_v53  ;;  %v2255_v59 = vstv %s1797_s27  ;;  %vm410_vm3 = vcmp.gt.f32.partialorder %v409_v37, 0.0  ;;  %s1609_s24 = smov 16   ;;  %s1610_s27 = smov 24  }
 0x1e9   :  { %v2005_v54 = vmul.f32 %v2254_v39, %v688_v9  ;;  %v304_v47 = vmul.f32 %v2255_v59, %v301_v22  ;;  %v289_v58 = vadd.f32 %v288_v19, %v273_v32  ;;  %v396_v24 = vsel %vm394_vm15, %v393_v38, %v395_v43 }
 0x1ea   :  { %v411_v30 = vmul.f32 0.2, %v409_v37  ;;  %v2256_v46 = vrot.slane %v1921_v35, %v1850_v12  ;;  %v2257_v28 = vstv %s1799_s28  ;;  %v2258_v11 = vstv %s1801_s29 }
 0x1eb   :  { %v320_v41 = vmul.f32 %v2257_v28, %v317_v33  ;;  %v399_v60 = vmul.f32 %v2258_v11, %v396_v24  ;;  %v2259_v55 = vrot.slane %v1921_v35, %v1854_v13  ;;  %v456_v53 = vrot.slane %v1921_v35, %v1860_v16 }
 0x1ec   :  { %v425_v26 = vadd.f32 %v2256_v46, %v1761_v52  ;;  %v305_v38 = vadd.f32 %v304_v47, %v289_v58  ;;  %v412_v6 = vsel %vm410_vm3, %v409_v37, %v411_v30  ;;  %v2260_v1 = vstv %s1805_s30 }
 0x1ed   :  { %v441_v9 = vadd.f32 %v2259_v55, %v1755_v49  ;;  %v415_v52 = vmul.f32 %v2260_v1, %v412_v6  ;;  %v457_v22 = vadd.f32 %v456_v53, %v1759_v51  ;;  %v472_v19 = vrot.slane %v1921_v35, %v1868_v20 }
 0x1ee   :  { %vm426_vm4 = vcmp.gt.f32.partialorder %v425_v26, 0.0  ;;  %v427_v63 = vmul.f32 0.2, %v425_v26  ;;  %v321_v32 = vadd.f32 %v320_v41, %v305_v38  ;;  %v488_v49 = vrot.slane %v1921_v35, %v1856_v14 }
 0x1ef   :  { %vm442_vm5 = vcmp.gt.f32.partialorder %v441_v9, 0.0  ;;  %v443_v31 = vmul.f32 0.2, %v441_v9  ;;  %v416_v33 = vadd.f32 %v415_v52, %v399_v60  ;;  %v2261_v43 = vstv %s1809_s12 }
 0x1f0   :  { %v428_v44 = vsel %vm426_vm4, %v425_v26, %v427_v63  ;;  %vm458_vm6 = vcmp.gt.f32.partialorder %v457_v22, 0.0  ;;  %v2036_v59 = vsel %vm1988_vm13, %v321_v32, -1e+30  ;;  %v2262_v47 = vstv %s1811_s13  ;;  %s1611_s13 = smov 32  }
 0x1f1   :  { %v431_v37 = vmul.f32 %v2261_v43, %v428_v44  ;;  %v444_v39 = vsel %vm442_vm5, %v441_v9, %v443_v31  ;;  %v459_v58 = vmul.f32 0.2, %v457_v22  ;;  %v473_v24 = vadd.f32 %v472_v19, %v1769_v56 }
 0x1f2   :  { %v447_v51 = vmul.f32 %v2262_v47, %v444_v39  ;;  %v326_v30 = vsel %vm111_vm2, %v2036_v59, -inf  ;;  %v489_v26 = vadd.f32 %v488_v49, %v1793_v62  ;;  %v504_v28 = vrot.slane %v1921_v35, %v1858_v15 }
 0x1f3   :  { %v432_v46 = vadd.f32 %v431_v37, %v416_v33  ;;  %327 = vmax.xlane.f32.xlu1 %v326_v30  ;;  %v460_v41 = vsel %vm458_vm6, %v457_v22, %v459_v58  ;;  %vm474_vm7 = vcmp.gt.f32.partialorder %v473_v24, 0.0  ;;  %v475_v11 = vmul.f32 0.2, %v473_v24  ;;  %v890_v37 = vpop.permute.xlu1 %889 }
 0x1f4   :  { %vm590_vm8 = vcmp.gt.f32.partialorder %v1965_v18, 0.0  ;;  %v2263_v55 = vstv %s1813_s4  ;;  %vm490_vm9 = vcmp.gt.f32.partialorder %v489_v26, 0.0  ;;  %v491_v9 = vmul.f32 0.2, %v489_v26 }
 0x1f5   :  { %v448_v60 = vadd.f32 %v447_v51, %v432_v46  ;;  %v463_v56 = vmul.f32 %v2263_v55, %v460_v41  ;;  %v476_v53 = vsel %vm474_vm7, %v473_v24, %v475_v11  ;;  %v505_v62 = vadd.f32 %v504_v28, %v1836_v7 }
 0x1f6   :  { %v591_v38 = vmul.f32 0.2, %v1965_v18  ;;  %vm606_vm10 = vcmp.gt.f32.partialorder %v1968_v45, 0.0  ;;  %v2264_v6 = vstv %s1815_s14  ;;  %v492_v1 = vsel %vm490_vm9, %v489_v26, %v491_v9 }
 0x1f7   :  { %v464_v35 = vadd.f32 %v463_v56, %v448_v60  ;;  %v479_v63 = vmul.f32 %v2264_v6, %v476_v53  ;;  %v607_v52 = vmul.f32 0.2, %v1968_v45  ;;  %v2265_v31 = vstv %s1817_s15 }
 0x1f8   :  { %v495_v22 = vmul.f32 %v2265_v31, %v492_v1  ;;  %vm506_vm11 = vcmp.gt.f32.partialorder %v505_v62, 0.0  ;;  %v507_v32 = vmul.f32 0.2, %v505_v62  ;;  %v592_v7 = vsel %vm590_vm8, %v1965_v18, %v591_v38 }
 0x1f9   :  { %v480_v44 = vadd.f32 %v479_v63, %v464_v35  ;;  %v2266_v19 = vstv %s1825_s17  ;;  %v608_v33 = vsel %vm606_vm10, %v1968_v45, %v607_v52  ;;  %v621_v43 = vadd.f32 %v620_v29, %v1787_v61  ;;  %s2280_s17 = sld [smem:[#allocation20_spill]] }
 0x1fa   :  { %v595_v49 = vmul.f32 %v2266_v19, %v592_v7  ;;  %v508_v39 = vsel %vm506_vm11, %v505_v62, %v507_v32  ;;  %v2267_v47 = vstv %s1827_s3  ;;  %v637_v18 = vadd.f32 %v636_v42, %v1821_v3 }
 0x1fb   :  { %v611_v51 = vmul.f32 %v2267_v47, %v608_v33  ;;  %v652_v58 = vrot.slane %v1937_v5, %v1860_v16  ;;  %v496_v24 = vadd.f32 %v495_v22, %v480_v44  ;;  %v2268_v45 = vstv %s1823_s16 }
 0x1fc   :  { %v511_v30 = vmul.f32 %v2268_v45, %v508_v39  ;;  %vm622_vm12 = vcmp.gt.f32.partialorder %v621_v43, 0.0  ;;  %v623_v46 = vmul.f32 0.2, %v621_v43  ;;  %vm638_vm14 = vcmp.gt.f32.partialorder %v637_v18, 0.0 }
 0x1fd   :  { %v612_v61 = vadd.f32 %v611_v51, %v595_v49  ;;  %v639_v29 = vmul.f32 0.2, %v637_v18  ;;  %v653_v26 = vadd.f32 %v652_v58, %v1864_v17  ;;  %v2081_v28 = vadd.f32 %v895_v25, %v890_v37 }
 0x1fe   :  { %v512_v3 = vadd.f32 %v511_v30, %v496_v24  ;;  %v624_v42 = vsel %vm622_vm12, %v621_v43, %v623_v46  ;;  %v668_v41 = vrot.slane %v1937_v5, %v1868_v20  ;;  %v2269_v11 = vstv %s1829_s18 }
 0x1ff   :  { %v627_v60 = vmul.f32 %v2269_v11, %v624_v42  ;;  %v640_v55 = vsel %vm638_vm14, %v637_v18, %v639_v29  ;;  %vm654_vm15 = vcmp.gt.f32.partialorder %v653_v26, 0.0  ;;  %v655_v56 = vmul.f32 0.2, %v653_v26 }
 0x200   :  { %v2089_v9 = vsel %vm1988_vm13, %v512_v3, -1e+30  ;;  %v2270_v17 = vstv %s1834_s20  ;;  %v669_v15 = vadd.f32 %v668_v41, %v1840_v8  ;;  %vm785_vm3 = vcmp.gt.f32.partialorder %v1995_v48, 0.0 }
 0x201   :  { %v643_v53 = vmul.f32 %v2270_v17, %v640_v55  ;;  %v514_v5 = vsel %vm111_vm2, %v2089_v9, -inf  ;;  %v628_v25 = vadd.f32 %v627_v60, %v612_v61  ;;  %v656_v62 = vsel %vm654_vm15, %v653_v26, %v655_v56 }
 0x202   :  { %v786_v38 = vmul.f32 0.2, %v1995_v48  ;;  %515 = vmax.xlane.f32.xlu0 %v514_v5  ;;  %v2271_v35 = vstv %s1838_s6  ;;  %vm670_vm4 = vcmp.gt.f32.partialorder %v669_v15, 0.0  ;;  %v671_v63 = vmul.f32 0.2, %v669_v15 }
 0x203   :  { %v659_v6 = vmul.f32 %v2271_v35, %v656_v62  ;;  %vm801_vm5 = vcmp.gt.f32.partialorder %v1998_v34, 0.0  ;;  %v644_v8 = vadd.f32 %v643_v53, %v628_v25  ;;  %v802_v52 = vmul.f32 0.2, %v1998_v34 }
 0x204   :  { %v787_v1 = vsel %vm785_vm3, %v1995_v48, %v786_v38  ;;  %v816_v31 = vadd.f32 %v815_v57, %v1807_v0  ;;  %v672_v22 = vsel %vm670_vm4, %v669_v15, %v671_v63  ;;  %v2272_v32 = vstv %s1852_s0 }
 0x205   :  { %v790_v7 = vmul.f32 %v2272_v32, %v787_v1  ;;  %v832_v44 = vadd.f32 %v831_v23, %v1819_v2  ;;  %v847_v19 = vrot.slane %v1960_v21, %v1860_v16  ;;  %v660_v49 = vadd.f32 %v659_v6, %v644_v8 }
 0x206   :  { %v2273_v48 = vstv %s1842_s8  ;;  %v803_v43 = vsel %vm801_vm5, %v1998_v34, %v802_v52  ;;  %vm817_vm6 = vcmp.gt.f32.partialorder %v816_v31, 0.0  ;;  %v2274_v0 = vstv %s1862_s5 }
 0x207   :  { %v675_v33 = vmul.f32 %v2273_v48, %v672_v22  ;;  %v806_v12 = vmul.f32 %v2274_v0, %v803_v43  ;;  %v818_v57 = vmul.f32 0.2, %v816_v31  ;;  %vm833_vm7 = vcmp.gt.f32.partialorder %v832_v44, 0.0 }
 0x208   :  { %v834_v13 = vmul.f32 0.2, %v832_v44  ;;  %v848_v23 = vadd.f32 %v847_v19, %v1897_v40  ;;  %v863_v16 = vrot.slane %v1960_v21, %v1868_v20  ;;  %v879_v37 = vrot.slane %v1960_v21, %v1856_v14 }
 0x209   :  { %v676_v2 = vadd.f32 %v675_v33, %v660_v49  ;;  %v807_v34 = vadd.f32 %v806_v12, %v790_v7  ;;  %v819_v39 = vsel %vm817_vm6, %v816_v31, %v818_v57  ;;  %v869_v51 = vstv %s2095_s1  ;;  %s2281_s1 = sld [smem:[#allocation21_spill]] }
 0x20a   :  { %v835_v47 = vsel %vm833_vm7, %v832_v44, %v834_v13  ;;  %v2275_v58 = vstv %s1844_s11  ;;  %v2276_v45 = vstv %s1873_s19  ;;  %vm849_vm8 = vcmp.gt.f32.partialorder %v848_v23, 0.0  ;;  %s1607_s11 = smov 104  }
 0x20b   :  { %v692_v18 = vadd.f32 %v2005_v54, %v676_v2  ;;  %v707_v24 = vmul.f32 %v2275_v58, %v2007_v50  ;;  %v822_v40 = vmul.f32 %v2276_v45, %v819_v39  ;;  %vm897_vm9 = vcmp.gt.f32.partialorder %v2081_v28, 0.0 }
 0x20c   :  { %v850_v20 = vmul.f32 0.2, %v848_v23  ;;  %v864_v14 = vadd.f32 %v863_v16, %v1919_v36  ;;  %v880_v21 = vadd.f32 %v879_v37, %v1881_v27  ;;  %v898_v30 = vmul.f32 0.2, %v2081_v28 }
 0x20d   :  { %v708_v46 = vadd.f32 %v707_v24, %v692_v18  ;;  %v823_v61 = vadd.f32 %v822_v40, %v807_v34  ;;  %v2277_v54 = vstv %s1879_s10  ;;  %v2278_v41 = vstv %s1887_s9  ;;  %s1605_s9 = smov 120   ;;  %s1606_s10 = smov 112  }
 0x20e   :  { %v838_v29 = vmul.f32 %v2277_v54, %v835_v47  ;;  %v851_v26 = vsel %vm849_vm8, %v848_v23, %v850_v20  ;;  %vm865_vm10 = vcmp.gt.f32.partialorder %v864_v14, 0.0  ;;  %v866_v50 = vmul.f32 0.2, %v864_v14 }
 0x20f   :  { %vm881_vm11 = vcmp.gt.f32.partialorder %v880_v21, 0.0  ;;  %v709_v3 = vsel %vm1988_vm13, %v708_v46, -1e+30  ;;  %v854_v36 = vmul.f32 %v2278_v41, %v851_v26  ;;  %v882_v11 = vmul.f32 0.2, %v880_v21 }
 0x210   :  { %v839_v42 = vadd.f32 %v838_v29, %v823_v61  ;;  %v710_v27 = vsel %vm111_vm2, %v709_v3, -inf  ;;  %v867_v60 = vsel %vm865_vm10, %v864_v14, %v866_v50  ;;  %v885_v55 = vstv %s2120_s21  ;;  %s1612_s21 = smov 96  }
 0x211   :  { %711 = vmax.xlane.f32.xlu1 %v710_v27  ;;  %v870_v17 = vmul.f32 %v869_v51, %v867_v60  ;;  %v883_v53 = vsel %vm881_vm11, %v880_v21, %v882_v11  ;;  %v899_v15 = vsel %vm897_vm9, %v2081_v28, %v898_v30  ;;  %v901_v5 = vstv %s2130_s22  ;;  %s1613_s22 = smov [#allocation13]  }
 0x212   :  { %v855_v56 = vadd.f32 %v854_v36, %v839_v42  ;;  %v886_v62 = vmul.f32 %v885_v55, %v883_v53  ;;  %v902_v35 = vmul.f32 %v901_v5, %v899_v15  ;;  %v2279_v57 = vmov 0.0   ;;  %v1411_v5 = vld [vmem:[%s2239_s7 + $0x18] sm:$0xff]  }
 0x213   :  { %vm1032_vm12 = vcmask 523264  }
 0x214   :  { %v871_v25 = vadd.f32 %v870_v17, %v855_v56 }
 0x216   :  { %v887_v38 = vadd.f32 %v886_v62, %v871_v25  ;;  %v101_v62 = vld [vmem:[%s2234_s2] sm:$0xff] }
 0x218   :  { %v903_v6 = vadd.f32 %v902_v35, %v887_v38  ;;  %v1412_v38 = vld [vmem:[%s2239_s7 + $0x10] sm:$0xff]  }
 0x21a   :  { %v904_v63 = vsel %vm1988_vm13, %v903_v6, -1e+30  ;;  %vm990_vm13 = vcmask 261120  }
 0x21b   :  { %v905_v8 = vsel %vm111_vm2, %v904_v63, -inf }
 0x21c   :  { %906 = vmax.xlane.f32.xlu1 %v905_v8  ;;  %v1414_v8 = vld [vmem:[%s2239_s7] sm:$0xff]  }
 0x22d   :  { %527 = vrot.lane.b32.xlu1 %v1709_v10, %s1605_s9  ;;  %s1191_s9 = sshll.u32 %s1613_s22, 4  ;;  %s1192_s9 = int_to_ptr.vmem [resolvable:$true] %s1191_s9 }
 0x22e   :  { %p1538_p7 = scmp.lt.s32.totalorder %s1192_s9, %s1192_s9 }
 0x231   :  { %722 = vrot.lane.b32.xlu1 %v1709_v10, %s1606_s10  ;;  %s1533_s10 = scalar_lea.vmem %s1192_s9, 128 }
 0x232   :  { %p1534_p6 = scmp.ne.s32.totalorder %s1192_s9, %s1533_s10  ;;  %p1539_p8 = scmp.lt.s32.totalorder %s1533_s10, %s1533_s10 }
 0x234   :  { %p1540_p9 = por %p1539_p8, %p1538_p7 }
 0x236   :  { %p1541_p10 = pnand %p1540_p9, %p1534_p6 }
 0x27c   :  { %v328_v1 = vpop.xlane.xlu1 %327 }
 0x27d   :  { %v329_v28 = vsub.f32 %v2036_v59, %v328_v1 }
 0x27f   :  { %v330_v52 = vmul.f32 1.442695, %v329_v28 }
 0x281   :  { %1419 = vpow2.f32 %v330_v52 }
 0x28b   :  { %v516_v31 = vpop.xlane.xlu0 %515 }
 0x28c   :  { %v517_v22 = vsub.f32 %v2089_v9, %v516_v31  ;;  %v1240_v31 = vld [vmem:[#allocation10] ss:$0 sm:$0xff] }
 0x28e   :  { %v518_v32 = vmul.f32 1.442695, %v517_v22  ;;  %v1420_v4 = vpop.eup %1419 }
 0x28f   :  { %v332_v7 = vsel %vm111_vm2, %v1420_v4, 0.0 }
 0x290   :  { %1421 = vpow2.f32 %v518_v32  ;;  %333 = vadd.xlane.f32.xlu1 %v332_v7 }
 0x29a   :  { %v712_v44 = vpop.xlane.xlu1 %711 }
 0x29b   :  { %v713_v19 = vsub.f32 %v709_v3, %v712_v44 }
 0x29d   :  { %v714_v49 = vmul.f32 1.442695, %v713_v19  ;;  %v1422_v48 = vpop.eup %1421 }
 0x29e   :  { %v520_v33 = vsel %vm111_vm2, %v1422_v48, 0.0 }
 0x29f   :  { %1423 = vpow2.f32 %v714_v49  ;;  %521 = vadd.xlane.f32.xlu1 %v520_v33 }
 0x2a5   :  { %v907_v59 = vpop.xlane.xlu1 %906 }
 0x2a6   :  { %v908_v43 = vsub.f32 %v904_v63, %v907_v59  ;;  %v1413_v63 = vld [vmem:[%s2239_s7 + $0x8] sm:$0xff]   ;;  %v1415_v59 = vld [vmem:[%s2280_s17 + $0x18] sm:$0xff]  }
 0x2a8   :  { %v909_v0 = vmul.f32 1.442695, %v908_v43  ;;  %v1416_v43 = vld [vmem:[%s2280_s17 + $0x10] sm:$0xff]  }
 0x2a9   :  { %v528_v12 = vpop.permute.xlu1 %527 }
 0x2aa   :  { %1425 = vpow2.f32 %v909_v0  ;;  %v533_v9 = vsel %vm115_vm0, %v528_v12, 0  ;;  %v1417_v0 = vld [vmem:[%s2280_s17 + $0x8] sm:$0xff]   ;;  %v1242_v12 = vld [vmem:[#allocation11] ss:$0 sm:$0xff] }
 0x2ab   :  { %1288 = vmatpush3.bf16.msra.mxu0 %v533_v9 }
 0x2ac   :  { %1299 = vmatprep.subr.bf16.mxu0 %v2279_v57  ;;  %v1424_v13 = vpop.eup %1423 }
 0x2ad   :  { %v716_v2 = vsel %vm111_vm2, %v1424_v13, 0.0  ;;  %v723_v37 = vpop.permute.xlu1 %722 }
 0x2ae   :  { %717 = vadd.xlane.f32.xlu1 %v716_v2  ;;  %v728_v58 = vsel %vm115_vm0, %v723_v37, 0 }
 0x2b7   :  { %v1426_v23 = vpop.eup %1425 }
 0x2b8   :  { %v911_v16 = vsel %vm111_vm2, %v1426_v23, 0.0 }
 0x2b9   :  { %912 = vadd.xlane.f32.xlu1 %v911_v16 }
 0x2ca   :  { %917 = vrot.lane.b32.xlu1 %v1709_v10, %s1607_s11 }
 0x319   :  { %v334_v34 = vpop.xlane.xlu1 %333 }
 0x31a   :  { %1427 = vrcp.f32 %v334_v34 }
 0x327   :  { %v1428_v47 = vpop.eup %1427 }
 0x328   :  { %v522_v39 = vpop.xlane.xlu1 %521  ;;  %v336_v51 = vmul.f32 %v1428_v47, %v1420_v4  ;;  %v1418_v47 = vld [vmem:[%s2280_s17] sm:$0xff]  }
 0x329   :  { %1429 = vrcp.f32 %v522_v39 }
 0x32a   :  { %v337_v18 = vpack.c.bf16 %v336_v51, %v336_v51 }
 0x32c   :  { %1284 = vmatmul.mubr.msk.bf16.vlgmr.msra.gmra.mxu1 %vm111_vm2, %v337_v18 }
 0x32d   :  { %1294 = vmatpush3.bf16.msra.mxu1 %v728_v58  ;;  %1295 = vmatprep.mubr.msk.bf16.mxu1 %vm1571_vm1, %v2279_v57 }
 0x32e   :  { %1305 = vmatprep.subr.bf16.mxu1 %v2279_v57 }
 0x336   :  { %v1430_v10 = vpop.eup %1429 }
 0x337   :  { %v718_v24 = vpop.xlane.xlu1 %717  ;;  %v524_v45 = vmul.f32 %v1430_v10, %v1422_v48  ;;  %v1249_v10 = vld [vmem:[%s2281_s1] ss:$0 sm:$0xff] }
 0x338   :  { %1431 = vrcp.f32 %v718_v24 }
 0x339   :  { %v525_v40 = vpack.c.bf16 %v524_v45, %v524_v45 }
 0x33b   :  { %1290 = vmatmul.mubr.msk.bf16.vlgmr.msra.gmra.mxu0 %vm111_vm2, %v525_v40 }
 0x33c   :  { %1301 = vmatprep.mubr.msk.bf16.mxu0 %vm1571_vm1, %v2279_v57 }
 0x342   :  { %v913_v20 = vpop.xlane.xlu1 %912 }
 0x343   :  { %1433 = vrcp.f32 %v913_v20 }
 0x345   :  { %v1432_v14 = vpop.eup %1431 }
 0x346   :  { %v918_v21 = vpop.permute.xlu1 %917  ;;  %v720_v46 = vmul.f32 %v1432_v14, %v1424_v13 }
 0x347   :  { %v923_v30 = vsel %vm115_vm0, %v918_v21, 0  ;;  %vm579_vm0 = vcmask 130112  }
 0x348   :  { %1300 = vmatpush3.bf16.msra.mxu0 %v923_v30  ;;  %v721_v61 = vpack.c.bf16 %v720_v46, %v720_v46 }
 0x349   :  { %1317 = vmatprep.subr.bf16.mxu0 %v2279_v57 }
 0x34a   :  { %1296 = vmatmul.mubr.msk.bf16.vlgmr.msra.gmra.mxu1 %vm111_vm2, %v721_v61 }
 0x34b   :  { %1313 = vmatprep.mubr.msk.bf16.mxu1 %vm1571_vm1, %v2279_v57  ;;  %1306 = vmatpush3.bf16.msra.mxu1 %v1411_v5 }
 0x34c   :  { %1307 = vmatprep.subr.bf16.mxu1 %v2279_v57 }
 0x34f   :  { %1308 = vmatpush3.bf16.msra.mxu1 %v1412_v38 }
 0x350   :  { %v1434_v54 = vpop.eup %1433  ;;  %1309 = vmatprep.subr.bf16.mxu1 %v2279_v57 }
 0x351   :  { %v915_v29 = vmul.f32 %v1434_v54, %v1426_v23 }
 0x353   :  { %v916_v26 = vpack.c.bf16 %v915_v29, %v915_v29  ;;  %1310 = vmatpush3.bf16.msra.mxu1 %v1413_v63 }
 0x354   :  { %1311 = vmatprep.subr.bf16.mxu1 %v2279_v57 }
 0x355   :  { %1302 = vmatmul.mubr.msk.bf16.vlgmr.msra.gmra.mxu0 %vm111_vm2, %v916_v26 }
 0x356   :  { %1325 = vmatprep.mubr.msk.bf16.mxu0 %vm1571_vm1, %v2279_v57  ;;  %vm774_vm1 = vcmask 195712   ;;  %1318 = vmatpush3.bf16.msra.mxu0 %v1415_v59 }
 0x357   :  { %1312 = vmatpush3.bf16.msra.mxu1 %v1414_v8  ;;  %1319 = vmatprep.subr.bf16.mxu0 %v2279_v57 }
 0x35a   :  { %1320 = vmatpush3.bf16.msra.mxu0 %v1416_v43 }
 0x35b   :  { %1321 = vmatprep.subr.bf16.mxu0 %v2279_v57 }
 0x35e   :  { %1322 = vmatpush3.bf16.msra.mxu0 %v1417_v0 }
 0x35f   :  { %1323 = vmatprep.subr.bf16.mxu0 %v2279_v57 }
 0x362   :  { %1324 = vmatpush3.bf16.msra.mxu0 %v1418_v47 }
 0x3ec   :  { %v378_v50 = vpop.f32.mrf.mxu1 }
 0x3ed   :  { %384 = vst.msk [vmem:[#allocation2] sm:$0xff] %vm111_vm2, %v378_v50  ;;  %vm969_vm2 = vcmask 261312  }
 0x3ee   :  { %v1285_v3 = vpop.f32.mrf.mxu1 }
 0x3f0   :  { %v381_v42 = vpop.f32.mrf.mxu1 }
 0x3f2   :  { %v1286_v41 = vpop.f32.mrf.mxu1 }
 0x3fb   :  { %v569_v36 = vpop.f32.mrf.mxu0 }
 0x3fc   :  { %576 = vrot.lane.b32.xlu1 %v569_v36, %s1608_s23 }
 0x3fd   :  { %v1291_v11 = vpop.f32.mrf.mxu0 }
 0x3ff   :  { %v572_v27 = vpop.f32.mrf.mxu0 }
 0x401   :  { %v1292_v60 = vpop.f32.mrf.mxu0 }
 0x40a   :  { %v764_v55 = vpop.f32.mrf.mxu1 }
 0x40b   :  { %771 = vrot.lane.b32.xlu0 %v764_v55, %s1609_s24 }
 0x40c   :  { %v1297_v56 = vpop.f32.mrf.mxu1 }
 0x40e   :  { %v767_v17 = vpop.f32.mrf.mxu1 }
 0x410   :  { %v1298_v53 = vpop.f32.mrf.mxu1 }
 0x415   :  { %v959_v15 = vpop.f32.mrf.mxu0 }
 0x416   :  { %966 = vrot.lane.b32.xlu1 %v959_v15, %s1610_s27 }
 0x417   :  { %v1303_v25 = vpop.f32.mrf.mxu0 }
 0x419   :  { %v962_v35 = vpop.f32.mrf.mxu0 }
 0x41a   :  { %987 = vrot.lane.b32.xlu1 %v101_v62, %s1611_s13 }
 0x41b   :  { %v1304_v6 = vpop.f32.mrf.mxu0 }
 0x46e   :  { %v577_v1 = vpop.permute.xlu1 %576 }
 0x46f   :  { %580 = vst.msk [vmem:[#allocation2] sm:$0xff] %vm579_vm0, %v577_v1 }
 0x47d   :  { %v772_v28 = vpop.permute.xlu0 %771 }
 0x47e   :  { %775 = vst.msk [vmem:[#allocation2] sm:$0xff] %vm774_vm1, %v772_v28 }
 0x488   :  { %v967_v52 = vpop.permute.xlu1 %966 }
 0x489   :  { %970 = vst.msk [vmem:[#allocation2] sm:$0xff] %vm969_vm2, %v967_v52 }
 0x48c   :  { %v988_v19 = vpop.permute.xlu1 %987 }
 0x490   :  { %v971_v22 = vld [vmem:[#allocation2] sm:$0xff] }
 0x491   :  { %v979_v32 = vadd.f32 %v1240_v31, %v971_v22 }
 0x493   :  { %v1241_v4 = vmul.f32 -1.442695, %v979_v32 }
 0x495   :  { %1435 = vpow2.f32 %v1241_v4 }
 0x4a2   :  { %v1436_v7 = vpop.eup %1435 }
 0x4a3   :  { %v983_v44 = vadd.f32 1.0, %v1436_v7 }
 0x4a5   :  { %1437 = vrcp.f32 %v983_v44 }
 0x4b2   :  { %v1438_v49 = vpop.eup %1437 }
 0x4b3   :  { %v991_v48 = vsel %vm990_vm13, %v1438_v49, %v988_v19 }
 0x4b4   :  { %v992_v33 = vpack.c.bf16 %v991_v48, %v991_v48 }
 0x4b6   :  { %1314 = vmatmul.mubr.msk.bf16.vlgmr.msra.gmra.mxu1 %vm1032_vm12, %v992_v33 }
 0x576   :  { %v1070_v9 = vpop.f32.mrf.mxu1 }
 0x577   :  { %v1071_v13 = vadd.f32 %v1242_v12, %v1070_v9 }
 0x578   :  { %v1315_v2 = vpop.f32.mrf.mxu1 }
 0x579   :  { %v1248_v23 = vmul.f32 -1.442695, %v1071_v13 }
 0x57a   :  { %v1073_v16 = vpop.f32.mrf.mxu1 }
 0x57b   :  { %1439 = vpow2.f32 %v1248_v23 }
 0x57c   :  { %v1316_v37 = vpop.f32.mrf.mxu1 }
 0x588   :  { %v1440_v34 = vpop.eup %1439 }
 0x589   :  { %v1079_v39 = vadd.f32 1.0, %v1440_v34 }
 0x58b   :  { %1441 = vrcp.f32 %v1079_v39 }
 0x598   :  { %v1442_v51 = vpop.eup %1441 }
 0x599   :  { %v1082_v18 = vmul.f32 %v1442_v51, %v101_v62  ;;  %v1173_v46 = vsub.f32 1.0, %v1442_v51  ;;  %v1172_v54 = vmul.f32 %v1442_v51, %v988_v19 }
 0x59b   :  { %1084 = vrot.lane.b32.xlu1 %v1082_v18, %s1611_s13 }
 0x60d   :  { %v1085_v57 = vpop.permute.xlu1 %1084 }
 0x60e   :  { %v1087_v58 = vsel %vm990_vm13, %v1438_v49, %v1085_v57 }
 0x60f   :  { %v1088_v24 = vpack.c.bf16 %v1087_v58, %v1087_v58 }
 0x611   :  { %1326 = vmatmul.mubr.msk.bf16.vlgmr.msra.gmra.mxu0 %vm1032_vm12, %v1088_v24 }
 0x6d1   :  { %v1165_v45 = vpop.f32.mrf.mxu0 }
 0x6d2   :  { %v1166_v40 = vadd.f32 %v1249_v10, %v1165_v45 }
 0x6d3   :  { %v1327_v20 = vpop.f32.mrf.mxu0 }
 0x6d4   :  { %1443 = vtanh.f32 %v1166_v40 }
 0x6d5   :  { %v1168_v14 = vpop.f32.mrf.mxu0 }
 0x6d7   :  { %v1328_v21 = vpop.f32.mrf.mxu0 }
 0x6e1   :  { %v1444_v30 = vpop.eup %1443 }
 0x6e2   :  { %1175 = vrot.lane.b32.xlu1 %v1444_v30, %s1611_s13 }
 0x754   :  { %v1176_v61 = vpop.permute.xlu1 %1175 }
 0x755   :  { %v1178_v29 = vmul.f32 %v1176_v61, %v1173_v46 }
 0x757   :  { %v1179_v26 = vadd.f32 %v1178_v29, %v1172_v54 }
 0x759   :  { %1181 = vrot.lane.b32.xlu1 %v1179_v26, %s1612_s21 }
 0x7cb   :  { %v1182_v50 = vpop.permute.xlu1 %1181 }
 0x7cc   :  { %1184 = vst.msk [vmem:[#allocation13] sm:$0xff] %vm990_vm13, %v1182_v50 }
 0x7cd   :  { %1544 = shalt.err (!%p1541_p10)
}
 0x7ce   :  { %s2282_s24 = sld [smem:[#allocation22_spill]] }
 0x7d4   :  { %1194 = dma.vmem_to_hbm [thread:$0]  %s1192_s9, 128, %s2282_s24, [#allocation5]  }
 0x7d5   :  { %1563 = dma.done.wait [#allocation5], 128  }
 0x7d6   :  { %1564 = vsyncadd [#allocation5], 4294967168 }
 0x7d7   :  { %1198 = vsyncpa [#allocation4], 1 }
 0x7d8   :  { %1199 = vsyncpa [#allocation8], 1 }
 0x7d9   :  { %1200 = vsyncpa [#allocation12], 1 }
 0x7da   :  { %1201 = vsyncpa [#allocation5], 1 }
 0x7db   :  { %1202 = vsyncpa [#allocation6], 1 }

</bundles_post_ra>
